<compile_context>
chip_gen: v7x
topology: tpu7x:2x2x1
jax: 0.10.0
libtpu: 0.0.40
codegen_flags: <defaults>
</compile_context>

<pallas_src>
import jax
import jax.numpy as jnp
from jax.experimental import pallas as pl
from jax.experimental.pallas import tpu as pltpu


def _encoder_kernel(x_ref, w1_ref, b1_ref, w2_ref, b2_ref, wh_ref, bh_ref,
                    out_ref, h1_ref, h2_ref):
    # shared1: bf16 operands, f32 accumulation; bias + ReLU in f32.
    h1 = jnp.dot(x_ref[...], w1_ref[...], preferred_element_type=jnp.float32)
    h1 = jnp.maximum(h1 + b1_ref[...], 0.0)
    h1_ref[...] = h1.astype(h1_ref.dtype)          # stage in VMEM (compute dtype)

    # shared2
    h2 = jnp.dot(h1_ref[...], w2_ref[...], preferred_element_type=jnp.float32)
    h2 = jnp.maximum(h2 + b2_ref[...], 0.0)
    h2_ref[...] = h2.astype(h2_ref.dtype)

    # fused heads: one (tile_m, H) @ (H, 2*O) matmul -> [mu | log_var] slab.
    heads = jnp.dot(h2_ref[...], wh_ref[...], preferred_element_type=jnp.float32)
    out_ref[...] = (heads + bh_ref[...]).astype(out_ref.dtype)


def _round_up(n, m):
    return ((n + m - 1) // m) * m


def encoder_forward(x, params, *, tile_m=256, compute_dtype=jnp.bfloat16,
                    single_buffer_weights=True):
    """x: (B, in_dims) float32. params: dict of (in, out) weights + (1, out) biases."""
    cd = compute_dtype
    w1 = params["w1"].astype(cd)
    b1 = params["b1"].astype(jnp.float32)
    w2 = params["w2"].astype(cd)
    b2 = params["b2"].astype(jnp.float32)
    # Fuse the two heads: [Wmu | Wlv] -> (H, 2*O), [bmu | blv] -> (1, 2*O).
    wh = jnp.concatenate([params["wmu"], params["wlv"]], axis=1).astype(cd)
    bh = jnp.concatenate([params["bmu"], params["blv"]], axis=1).astype(jnp.float32)

    B, D_in = x.shape
    H = w1.shape[1]
    O = params["wmu"].shape[1]
    O2 = 2 * O

    # Pick an effective batch tile (multiple of 8) and pad the batch so the
    # grid covers it exactly -- no assert on B % tile_m.
    tm = min(tile_m, _round_up(B, 8))
    b_pad = _round_up(B, tm)
    x_p = x.astype(cd)
    if b_pad != B:
        x_p = jnp.pad(x_p, ((0, b_pad - B), (0, 0)))

    grid = (b_pad // tm,)

    # Grid-invariant weights/biases: constant index_map; single-buffer them.
    pipeline_mode = pl.Buffered(1) if single_buffer_weights else None

    def full(shape):
        if pipeline_mode is not None:
            return pl.BlockSpec(shape, lambda i: (0, 0), pipeline_mode=pipeline_mode)
        return pl.BlockSpec(shape, lambda i: (0, 0))

    out = pl.pallas_call(
        _encoder_kernel,
        out_shape=jax.ShapeDtypeStruct((b_pad, O2), jnp.float32),
        grid_spec=pltpu.PrefetchScalarGridSpec(
            num_scalar_prefetch=0,
            grid=grid,
            in_specs=[
                pl.BlockSpec((tm, D_in), lambda i: (i, 0)),   # x batch tile
                full((D_in, H)), full((1, H)),                # shared1
                full((H, H)),    full((1, H)),                # shared2
                full((H, O2)),   full((1, O2)),               # fused mu|log_var head
            ],
            out_specs=pl.BlockSpec((tm, O2), lambda i: (i, 0)),
            scratch_shapes=[
                pltpu.VMEM((tm, H), cd),                      # h1 staging
                pltpu.VMEM((tm, H), cd),                      # h2 staging
            ],
        ),
        compiler_params=pltpu.CompilerParams(
            dimension_semantics=("parallel",)),
    )(x_p, w1, b1, w2, b2, wh, bh)

    out = out[:B]
    return out[:, :O], out[:, O:]


def init_params(key, in_dims, shared_nodes, out_dims):
    """Deterministic synthetic parameters (weights stored as (in, out))."""
    ks = jax.random.split(key, 8)
    scale = 0.02
    return {
        "w1":  scale * jax.random.normal(ks[0], (in_dims, shared_nodes), jnp.float32),
        "b1":  scale * jax.random.normal(ks[1], (1, shared_nodes), jnp.float32),
        "w2":  scale * jax.random.normal(ks[2], (shared_nodes, shared_nodes), jnp.float32),
        "b2":  scale * jax.random.normal(ks[3], (1, shared_nodes), jnp.float32),
        "wmu": scale * jax.random.normal(ks[4], (shared_nodes, out_dims), jnp.float32),
        "bmu": scale * jax.random.normal(ks[5], (1, out_dims), jnp.float32),
        "wlv": scale * jax.random.normal(ks[6], (shared_nodes, out_dims), jnp.float32),
        "blv": scale * jax.random.normal(ks[7], (1, out_dims), jnp.float32),
    }


def reference_forward(x, p, compute_dtype=jnp.bfloat16):
    """Pure-JAX reference with the same cast scheme (bf16 operands, f32 acc)."""
    cd = compute_dtype
    h1 = jax.nn.relu(
        jnp.dot(x.astype(cd), p["w1"].astype(cd),
                preferred_element_type=jnp.float32) + p["b1"]).astype(cd)
    h2 = jax.nn.relu(
        jnp.dot(h1, p["w2"].astype(cd),
                preferred_element_type=jnp.float32) + p["b2"]).astype(cd)
    mu = jnp.dot(h2, p["wmu"].astype(cd), preferred_element_type=jnp.float32) + p["bmu"]
    lv = jnp.dot(h2, p["wlv"].astype(cd), preferred_element_type=jnp.float32) + p["blv"]
    return mu, lv


if __name__ == "__main__":
    # Small, TPU-friendly shapes consistent with the module's structure.
    # B=12 deliberately exercises the batch-padding path (no multiple-of-tile
    # requirement anymore).
    B, IN_DIMS, SHARED, OUT_DIMS = 12, 256, 512, 128

    key = jax.random.PRNGKey(0)
    kx, kp = jax.random.split(key)
    x = jax.random.normal(kx, (B, IN_DIMS), jnp.float32)
    params = init_params(kp, IN_DIMS, SHARED, OUT_DIMS)

    try:
        mu, log_var = encoder_forward(x, params)
        jax.block_until_ready((mu, log_var))
    except Exception:
        # Fallback if this JAX build rejects single-buffered (Buffered(1)) specs.
        mu, log_var = encoder_forward(x, params, single_buffer_weights=False)
        jax.block_until_ready((mu, log_var))

    mu_ref, lv_ref = reference_forward(x, params)
    assert mu.shape == (B, OUT_DIMS) and log_var.shape == (B, OUT_DIMS)
    assert jnp.allclose(mu, mu_ref, atol=5e-3, rtol=5e-3)
    assert jnp.allclose(log_var, lv_ref, atol=5e-3, rtol=5e-3)

    print("KERNEL_OK")
</pallas_src>

<mosaic_0001>
module attributes {stable_mosaic.version = 11 : i64} {
  func.func @_encoder_kernel(%arg0: i32, %arg1: memref<16x256xbf16, #tpu.memory_space<vmem>>, %arg2: memref<256x512xbf16, #tpu.memory_space<vmem>>, %arg3: memref<1x512xf32, #tpu.memory_space<vmem>>, %arg4: memref<512x512xbf16, #tpu.memory_space<vmem>>, %arg5: memref<1x512xf32, #tpu.memory_space<vmem>>, %arg6: memref<512x256xbf16, #tpu.memory_space<vmem>>, %arg7: memref<1x256xf32, #tpu.memory_space<vmem>>, %arg8: memref<16x256xf32, #tpu.memory_space<vmem>>, %arg9: memref<16x512xbf16, #tpu.memory_space<vmem>>, %arg10: memref<16x512xbf16, #tpu.memory_space<vmem>>) attributes {dimension_semantics = [#tpu.dimension_semantics<parallel>], iteration_bounds = array<i64: 1>, scalar_prefetch = 0 : i64, scratch_operands = 2 : i64, tpu.core_type = #tpu.core_type<tc>, window_params = [{transform_indices = @transform_0, window_bounds = array<i64: 16, 256>}, {pipeline_mode = #tpu.pipeline_mode<synchronous>, transform_indices = @transform_1, window_bounds = array<i64: 256, 512>}, {pipeline_mode = #tpu.pipeline_mode<synchronous>, transform_indices = @transform_2, window_bounds = array<i64: 1, 512>}, {pipeline_mode = #tpu.pipeline_mode<synchronous>, transform_indices = @transform_3, window_bounds = array<i64: 512, 512>}, {pipeline_mode = #tpu.pipeline_mode<synchronous>, transform_indices = @transform_4, window_bounds = array<i64: 1, 512>}, {pipeline_mode = #tpu.pipeline_mode<synchronous>, transform_indices = @transform_5, window_bounds = array<i64: 512, 256>}, {pipeline_mode = #tpu.pipeline_mode<synchronous>, transform_indices = @transform_6, window_bounds = array<i64: 1, 256>}, {transform_indices = @transform_7, window_bounds = array<i64: 16, 256>}]} {
    %c0 = arith.constant 0 : index
    %c0_0 = arith.constant 0 : index
    %0 = vector.load %arg1[%c0, %c0_0] : memref<16x256xbf16, #tpu.memory_space<vmem>>, vector<16x256xbf16>
    %c0_1 = arith.constant 0 : index
    %c0_2 = arith.constant 0 : index
    %1 = vector.load %arg2[%c0_1, %c0_2] : memref<256x512xbf16, #tpu.memory_space<vmem>>, vector<256x512xbf16>
    %cst = arith.constant dense<0.000000e+00> : vector<16x512xf32>
    %2 = tpu.matmul %0, %1, %cst {dimension_numbers = #tpu.dot_dimension_numbers<[1], [0], [0], [1], [0, 0, 1, 1], [], []>} : vector<16x256xbf16>, vector<256x512xbf16>, vector<16x512xf32> -> vector<16x512xf32>
    %c0_3 = arith.constant 0 : index
    %c0_4 = arith.constant 0 : index
    %3 = vector.load %arg3[%c0_3, %c0_4] : memref<1x512xf32, #tpu.memory_space<vmem>>, vector<1x512xf32>
    %4 = vector.broadcast %3 : vector<1x512xf32> to vector<16x512xf32>
    %5 = arith.addf %2, %4 : vector<16x512xf32>
    %cst_5 = arith.constant 0.000000e+00 : f32
    %6 = vector.broadcast %cst_5 : f32 to vector<16x512xf32>
    %7 = arith.maximumf %5, %6 : vector<16x512xf32>
    %8 = arith.truncf %7 : vector<16x512xf32> to vector<16x512xbf16>
    %c0_6 = arith.constant 0 : index
    %c0_7 = arith.constant 0 : index
    %9 = vector.load %arg9[%c0_6, %c0_7] : memref<16x512xbf16, #tpu.memory_space<vmem>>, vector<16x512xbf16>
    tpu.vector_store %arg9[%c0_6, %c0_7], %8 {strides = array<i32>} : memref<16x512xbf16, #tpu.memory_space<vmem>>, vector<16x512xbf16>,
    %c0_8 = arith.constant 0 : index
    %c0_9 = arith.constant 0 : index
    %10 = vector.load %arg9[%c0_8, %c0_9] : memref<16x512xbf16, #tpu.memory_space<vmem>>, vector<16x512xbf16>
    %c0_10 = arith.constant 0 : index
    %c0_11 = arith.constant 0 : index
    %11 = vector.load %arg4[%c0_10, %c0_11] : memref<512x512xbf16, #tpu.memory_space<vmem>>, vector<512x512xbf16>
    %cst_12 = arith.constant dense<0.000000e+00> : vector<16x512xf32>
    %12 = tpu.matmul %10, %11, %cst_12 {dimension_numbers = #tpu.dot_dimension_numbers<[1], [0], [0], [1], [0, 0, 1, 1], [], []>} : vector<16x512xbf16>, vector<512x512xbf16>, vector<16x512xf32> -> vector<16x512xf32>
    %c0_13 = arith.constant 0 : index
    %c0_14 = arith.constant 0 : index
    %13 = vector.load %arg5[%c0_13, %c0_14] : memref<1x512xf32, #tpu.memory_space<vmem>>, vector<1x512xf32>
    %14 = vector.broadcast %13 : vector<1x512xf32> to vector<16x512xf32>
    %15 = arith.addf %12, %14 : vector<16x512xf32>
    %cst_15 = arith.constant 0.000000e+00 : f32
    %16 = vector.broadcast %cst_15 : f32 to vector<16x512xf32>
    %17 = arith.maximumf %15, %16 : vector<16x512xf32>
    %18 = arith.truncf %17 : vector<16x512xf32> to vector<16x512xbf16>
    %c0_16 = arith.constant 0 : index
    %c0_17 = arith.constant 0 : index
    %19 = vector.load %arg10[%c0_16, %c0_17] : memref<16x512xbf16, #tpu.memory_space<vmem>>, vector<16x512xbf16>
    tpu.vector_store %arg10[%c0_16, %c0_17], %18 {strides = array<i32>} : memref<16x512xbf16, #tpu.memory_space<vmem>>, vector<16x512xbf16>,
    %c0_18 = arith.constant 0 : index
    %c0_19 = arith.constant 0 : index
    %20 = vector.load %arg10[%c0_18, %c0_19] : memref<16x512xbf16, #tpu.memory_space<vmem>>, vector<16x512xbf16>
    %c0_20 = arith.constant 0 : index
    %c0_21 = arith.constant 0 : index
    %21 = vector.load %arg6[%c0_20, %c0_21] : memref<512x256xbf16, #tpu.memory_space<vmem>>, vector<512x256xbf16>
    %cst_22 = arith.constant dense<0.000000e+00> : vector<16x256xf32>
    %22 = tpu.matmul %20, %21, %cst_22 {dimension_numbers = #tpu.dot_dimension_numbers<[1], [0], [0], [1], [0, 0, 1, 1], [], []>} : vector<16x512xbf16>, vector<512x256xbf16>, vector<16x256xf32> -> vector<16x256xf32>
    %c0_23 = arith.constant 0 : index
    %c0_24 = arith.constant 0 : index
    %23 = vector.load %arg7[%c0_23, %c0_24] : memref<1x256xf32, #tpu.memory_space<vmem>>, vector<1x256xf32>
    %24 = vector.broadcast %23 : vector<1x256xf32> to vector<16x256xf32>
    %25 = arith.addf %22, %24 : vector<16x256xf32>
    %c0_25 = arith.constant 0 : index
    %c0_26 = arith.constant 0 : index
    %26 = vector.load %arg8[%c0_25, %c0_26] : memref<16x256xf32, #tpu.memory_space<vmem>>, vector<16x256xf32>
    tpu.vector_store %arg8[%c0_25, %c0_26], %25 {strides = array<i32>} : memref<16x256xf32, #tpu.memory_space<vmem>>, vector<16x256xf32>,
    return
  }
  func.func @transform_0(%arg0: i32) -> (i32, i32) {
    %c0_i32 = arith.constant 0 : i32
    %c0_i32_0 = arith.constant 0 : i32
    return %arg0, %c0_i32 : i32, i32
  }
  func.func @transform_1(%arg0: i32) -> (i32, i32) {
    %c0_i32 = arith.constant 0 : i32
    %c0_i32_0 = arith.constant 0 : i32
    %c0_i32_1 = arith.constant 0 : i32
    return %c0_i32, %c0_i32_0 : i32, i32
  }
  func.func @transform_2(%arg0: i32) -> (i32, i32) {
    %c0_i32 = arith.constant 0 : i32
    %c0_i32_0 = arith.constant 0 : i32
    %c0_i32_1 = arith.constant 0 : i32
    return %c0_i32, %c0_i32_0 : i32, i32
  }
  func.func @transform_3(%arg0: i32) -> (i32, i32) {
    %c0_i32 = arith.constant 0 : i32
    %c0_i32_0 = arith.constant 0 : i32
    %c0_i32_1 = arith.constant 0 : i32
    return %c0_i32, %c0_i32_0 : i32, i32
  }
  func.func @transform_4(%arg0: i32) -> (i32, i32) {
    %c0_i32 = arith.constant 0 : i32
    %c0_i32_0 = arith.constant 0 : i32
    %c0_i32_1 = arith.constant 0 : i32
    return %c0_i32, %c0_i32_0 : i32, i32
  }
  func.func @transform_5(%arg0: i32) -> (i32, i32) {
    %c0_i32 = arith.constant 0 : i32
    %c0_i32_0 = arith.constant 0 : i32
    %c0_i32_1 = arith.constant 0 : i32
    return %c0_i32, %c0_i32_0 : i32, i32
  }
  func.func @transform_6(%arg0: i32) -> (i32, i32) {
    %c0_i32 = arith.constant 0 : i32
    %c0_i32_0 = arith.constant 0 : i32
    %c0_i32_1 = arith.constant 0 : i32
    return %c0_i32, %c0_i32_0 : i32, i32
  }
  func.func @transform_7(%arg0: i32) -> (i32, i32) {
    %c0_i32 = arith.constant 0 : i32
    %c0_i32_0 = arith.constant 0 : i32
    return %arg0, %c0_i32 : i32, i32
  }
}

module attributes {stable_mosaic.version = 11 : i64} {
  func.func @_encoder_kernel(%arg0: i32, %arg1: memref<16x256xbf16, #tpu.memory_space<vmem>>, %arg2: memref<256x512xbf16, #tpu.memory_space<vmem>>, %arg3: memref<1x512xf32, #tpu.memory_space<vmem>>, %arg4: memref<512x512xbf16, #tpu.memory_space<vmem>>, %arg5: memref<1x512xf32, #tpu.memory_space<vmem>>, %arg6: memref<512x256xbf16, #tpu.memory_space<vmem>>, %arg7: memref<1x256xf32, #tpu.memory_space<vmem>>, %arg8: memref<16x256xf32, #tpu.memory_space<vmem>>, %arg9: memref<16x512xbf16, #tpu.memory_space<vmem>>, %arg10: memref<16x512xbf16, #tpu.memory_space<vmem>>) attributes {dimension_semantics = [#tpu.dimension_semantics<parallel>], iteration_bounds = array<i64: 1>, scalar_prefetch = 0 : i64, scratch_operands = 2 : i64, tpu.core_type = #tpu.core_type<tc>, window_params = [{transform_indices = @transform_0, window_bounds = array<i64: 16, 256>}, {pipeline_mode = #tpu.pipeline_mode<synchronous>, transform_indices = @transform_1, window_bounds = array<i64: 256, 512>}, {pipeline_mode = #tpu.pipeline_mode<synchronous>, transform_indices = @transform_2, window_bounds = array<i64: 1, 512>}, {pipeline_mode = #tpu.pipeline_mode<synchronous>, transform_indices = @transform_3, window_bounds = array<i64: 512, 512>}, {pipeline_mode = #tpu.pipeline_mode<synchronous>, transform_indices = @transform_4, window_bounds = array<i64: 1, 512>}, {pipeline_mode = #tpu.pipeline_mode<synchronous>, transform_indices = @transform_5, window_bounds = array<i64: 512, 256>}, {pipeline_mode = #tpu.pipeline_mode<synchronous>, transform_indices = @transform_6, window_bounds = array<i64: 1, 256>}, {transform_indices = @transform_7, window_bounds = array<i64: 16, 256>}]} {
    %c0 = arith.constant 0 : index
    %c0_0 = arith.constant 0 : index
    %0 = vector.load %arg1[%c0, %c0_0] : memref<16x256xbf16, #tpu.memory_space<vmem>>, vector<16x256xbf16>
    %c0_1 = arith.constant 0 : index
    %c0_2 = arith.constant 0 : index
    %1 = vector.load %arg2[%c0_1, %c0_2] : memref<256x512xbf16, #tpu.memory_space<vmem>>, vector<256x512xbf16>
    %cst = arith.constant dense<0.000000e+00> : vector<16x512xf32>
    %2 = tpu.matmul %0, %1, %cst {dimension_numbers = #tpu.dot_dimension_numbers<[1], [0], [0], [1], [0, 0, 1, 1], [], []>} : vector<16x256xbf16>, vector<256x512xbf16>, vector<16x512xf32> -> vector<16x512xf32>
    %c0_3 = arith.constant 0 : index
    %c0_4 = arith.constant 0 : index
    %3 = vector.load %arg3[%c0_3, %c0_4] : memref<1x512xf32, #tpu.memory_space<vmem>>, vector<1x512xf32>
    %4 = vector.broadcast %3 : vector<1x512xf32> to vector<16x512xf32>
    %5 = arith.addf %2, %4 : vector<16x512xf32>
    %cst_5 = arith.constant 0.000000e+00 : f32
    %6 = vector.broadcast %cst_5 : f32 to vector<16x512xf32>
    %7 = arith.maximumf %5, %6 : vector<16x512xf32>
    %8 = arith.truncf %7 : vector<16x512xf32> to vector<16x512xbf16>
    %c0_6 = arith.constant 0 : index
    %c0_7 = arith.constant 0 : index
    %9 = vector.load %arg9[%c0_6, %c0_7] : memref<16x512xbf16, #tpu.memory_space<vmem>>, vector<16x512xbf16>
    tpu.vector_store %arg9[%c0_6, %c0_7], %8 {strides = array<i32>} : memref<16x512xbf16, #tpu.memory_space<vmem>>, vector<16x512xbf16>,
    %c0_8 = arith.constant 0 : index
    %c0_9 = arith.constant 0 : index
    %10 = vector.load %arg9[%c0_8, %c0_9] : memref<16x512xbf16, #tpu.memory_space<vmem>>, vector<16x512xbf16>
    %c0_10 = arith.constant 0 : index
    %c0_11 = arith.constant 0 : index
    %11 = vector.load %arg4[%c0_10, %c0_11] : memref<512x512xbf16, #tpu.memory_space<vmem>>, vector<512x512xbf16>
    %cst_12 = arith.constant dense<0.000000e+00> : vector<16x512xf32>
    %12 = tpu.matmul %10, %11, %cst_12 {dimension_numbers = #tpu.dot_dimension_numbers<[1], [0], [0], [1], [0, 0, 1, 1], [], []>} : vector<16x512xbf16>, vector<512x512xbf16>, vector<16x512xf32> -> vector<16x512xf32>
    %c0_13 = arith.constant 0 : index
    %c0_14 = arith.constant 0 : index
    %13 = vector.load %arg5[%c0_13, %c0_14] : memref<1x512xf32, #tpu.memory_space<vmem>>, vector<1x512xf32>
    %14 = vector.broadcast %13 : vector<1x512xf32> to vector<16x512xf32>
    %15 = arith.addf %12, %14 : vector<16x512xf32>
    %cst_15 = arith.constant 0.000000e+00 : f32
    %16 = vector.broadcast %cst_15 : f32 to vector<16x512xf32>
    %17 = arith.maximumf %15, %16 : vector<16x512xf32>
    %18 = arith.truncf %17 : vector<16x512xf32> to vector<16x512xbf16>
    %c0_16 = arith.constant 0 : index
    %c0_17 = arith.constant 0 : index
    %19 = vector.load %arg10[%c0_16, %c0_17] : memref<16x512xbf16, #tpu.memory_space<vmem>>, vector<16x512xbf16>
    tpu.vector_store %arg10[%c0_16, %c0_17], %18 {strides = array<i32>} : memref<16x512xbf16, #tpu.memory_space<vmem>>, vector<16x512xbf16>,
    %c0_18 = arith.constant 0 : index
    %c0_19 = arith.constant 0 : index
    %20 = vector.load %arg10[%c0_18, %c0_19] : memref<16x512xbf16, #tpu.memory_space<vmem>>, vector<16x512xbf16>
    %c0_20 = arith.constant 0 : index
    %c0_21 = arith.constant 0 : index
    %21 = vector.load %arg6[%c0_20, %c0_21] : memref<512x256xbf16, #tpu.memory_space<vmem>>, vector<512x256xbf16>
    %cst_22 = arith.constant dense<0.000000e+00> : vector<16x256xf32>
    %22 = tpu.matmul %20, %21, %cst_22 {dimension_numbers = #tpu.dot_dimension_numbers<[1], [0], [0], [1], [0, 0, 1, 1], [], []>} : vector<16x512xbf16>, vector<512x256xbf16>, vector<16x256xf32> -> vector<16x256xf32>
    %c0_23 = arith.constant 0 : index
    %c0_24 = arith.constant 0 : index
    %23 = vector.load %arg7[%c0_23, %c0_24] : memref<1x256xf32, #tpu.memory_space<vmem>>, vector<1x256xf32>
    %24 = vector.broadcast %23 : vector<1x256xf32> to vector<16x256xf32>
    %25 = arith.addf %22, %24 : vector<16x256xf32>
    %c0_25 = arith.constant 0 : index
    %c0_26 = arith.constant 0 : index
    %26 = vector.load %arg8[%c0_25, %c0_26] : memref<16x256xf32, #tpu.memory_space<vmem>>, vector<16x256xf32>
    tpu.vector_store %arg8[%c0_25, %c0_26], %25 {strides = array<i32>} : memref<16x256xf32, #tpu.memory_space<vmem>>, vector<16x256xf32>,
    return
  }
  func.func @transform_0(%arg0: i32) -> (i32, i32) {
    %c0_i32 = arith.constant 0 : i32
    %c0_i32_0 = arith.constant 0 : i32
    return %arg0, %c0_i32 : i32, i32
  }
  func.func @transform_1(%arg0: i32) -> (i32, i32) {
    %c0_i32 = arith.constant 0 : i32
    %c0_i32_0 = arith.constant 0 : i32
    %c0_i32_1 = arith.constant 0 : i32
    return %c0_i32, %c0_i32_0 : i32, i32
  }
  func.func @transform_2(%arg0: i32) -> (i32, i32) {
    %c0_i32 = arith.constant 0 : i32
    %c0_i32_0 = arith.constant 0 : i32
    %c0_i32_1 = arith.constant 0 : i32
    return %c0_i32, %c0_i32_0 : i32, i32
  }
  func.func @transform_3(%arg0: i32) -> (i32, i32) {
    %c0_i32 = arith.constant 0 : i32
    %c0_i32_0 = arith.constant 0 : i32
    %c0_i32_1 = arith.constant 0 : i32
    return %c0_i32, %c0_i32_0 : i32, i32
  }
  func.func @transform_4(%arg0: i32) -> (i32, i32) {
    %c0_i32 = arith.constant 0 : i32
    %c0_i32_0 = arith.constant 0 : i32
    %c0_i32_1 = arith.constant 0 : i32
    return %c0_i32, %c0_i32_0 : i32, i32
  }
  func.func @transform_5(%arg0: i32) -> (i32, i32) {
    %c0_i32 = arith.constant 0 : i32
    %c0_i32_0 = arith.constant 0 : i32
    %c0_i32_1 = arith.constant 0 : i32
    return %c0_i32, %c0_i32_0 : i32, i32
  }
  func.func @transform_6(%arg0: i32) -> (i32, i32) {
    %c0_i32 = arith.constant 0 : i32
    %c0_i32_0 = arith.constant 0 : i32
    %c0_i32_1 = arith.constant 0 : i32
    return %c0_i32, %c0_i32_0 : i32, i32
  }
  func.func @transform_7(%arg0: i32) -> (i32, i32) {
    %c0_i32 = arith.constant 0 : i32
    %c0_i32_0 = arith.constant 0 : i32
    return %arg0, %c0_i32 : i32, i32
  }
}

</mosaic_0001>

<bundles_post_ra>
// kernel: tpu_custom_call.1
= control target key start
LH: loop header
LB: loop body
LE: loop exit
PB: predicated region body
PF: predicated region fallthrough
CT: control target
= control target key end

     0   :  { %12 = vsyncpa [#allocation5], 0  ;;  %s3070_s0 = inlined_call_operand.hbm [shape: bf16[16,256], index: 0, kind: input, shape index: {}]   ;;  %s3071_s1 = inlined_call_operand.hbm [shape: bf16[256,512], index: 1, kind: input, shape index: {}]   ;;  %s3072_s2 = inlined_call_operand.vmem [shape: f32[1,512], index: 2, kind: input, shape index: {}]   ;;  %s3073_s3 = inlined_call_operand.hbm [shape: bf16[512,512], index: 3, kind: input, shape index: {}]   ;;  %s3074_s4 = inlined_call_operand.vmem [shape: f32[1,512], index: 4, kind: input, shape index: {}]   ;;  %s3075_s5 = inlined_call_operand.hbm [shape: bf16[512,256], index: 5, kind: input, shape index: {}]   ;;  %s3076_s6 = inlined_call_operand.vmem [shape: f32[1,256], index: 6, kind: input, shape index: {}]   ;;  %s3077_s7 = inlined_call_operand.hbm [shape: f32[16,256], index: 7, kind: output, shape index: {}]  }
   0x1   :  { %13 = vsyncpa [#allocation8], 0 }
   0x2   :  { %14 = vsyncpa [#allocation11], 0 }
   0x3   :  { %15 = vsyncpa [#allocation6], 0  ;;  %s2889_s24 = smov [#allocation7]   ;;  %s2771_s28 = scalar_lea.hbm %s3071_s1, 8192 }
   0x4   :  { %s33_s25 = sshll.u32 %s2889_s24, 4  ;;  %p2772_p0 = scmp.ne.s32.totalorder %s3071_s1, %s2771_s28  ;;  %s34_s25 = int_to_ptr.vmem [resolvable:$true] %s33_s25 }
   0x5   :  { %p2775_p1 = scmp.lt.u32.totalorder %s2771_s28, %s3071_s1 }
   0x7   :  { %p2777_p2 = pnand %p2775_p1, %p2772_p0 }
   0x9   :  { %2780 = shalt.err (!%p2777_p2)
}
   0xa   :  { %s2781_s10 = scalar_lea.vmem %s34_s25, 8192  ;;  %p2786_p4 = scmp.lt.s32.totalorder %s34_s25, %s34_s25 }
   0xb   :  { %p2782_p3 = scmp.ne.s32.totalorder %s34_s25, %s2781_s10  ;;  %p2787_p5 = scmp.lt.s32.totalorder %s2781_s10, %s2781_s10 }
   0xd   :  { %p2788_p6 = por %p2787_p5, %p2786_p4 }
   0xf   :  { %p2789_p7 = pnand %p2788_p6, %p2782_p3 }
  0x11   :  { %2792 = shalt.err (!%p2789_p7)
}
  0x12   :  { %s2890_s11 = smov 256   ;;  %s2891_s12 = smov 16  }
  0x13   :  { %39 = dma.hbm_to_vmem [thread:$0]  %s3071_s1, 8192, %s34_s25, [#allocation8], %s2890_s11, %s2890_s11, %s2891_s12  }
  0x14   :  { %s2892_s15 = smov [#allocation4]   ;;  %s2793_s19 = scalar_lea.hbm %s3070_s0, 256 }
  0x15   :  { %s21_s16 = sshll.u32 %s2892_s15, 4  ;;  %p2794_p8 = scmp.ne.s32.totalorder %s3070_s0, %s2793_s19  ;;  %s22_s16 = int_to_ptr.vmem [resolvable:$true] %s21_s16 }
  0x16   :  { %p2797_p9 = scmp.lt.u32.totalorder %s2793_s19, %s3070_s0 }
  0x18   :  { %p2799_p10 = pnand %p2797_p9, %p2794_p8 }
  0x1a   :  { %2802 = shalt.err (!%p2799_p10)
}
  0x1b   :  { %s2803_s24 = scalar_lea.vmem %s22_s16, 256  ;;  %p2808_p12 = scmp.lt.s32.totalorder %s22_s16, %s22_s16 }
  0x1c   :  { %p2804_p11 = scmp.ne.s32.totalorder %s22_s16, %s2803_s24  ;;  %p2809_p13 = scmp.lt.s32.totalorder %s2803_s24, %s2803_s24 }
  0x1e   :  { %p2810_p0 = por %p2809_p13, %p2808_p12 }
  0x20   :  { %p2811_p1 = pnand %p2810_p0, %p2804_p11 }
  0x22   :  { %2814 = shalt.err (!%p2811_p1)
}
  0x23   :  { %s2893_s1 = smov 128   ;;  %s2894_s25 = smov 8  }
  0x24   :  { %27 = dma.hbm_to_vmem [thread:$0]  %s3070_s0, 256, %s22_s16, [#allocation5], %s2893_s1, %s2893_s1, %s2894_s25  }
  0x25   :  { %s2895_s28 = smov [#allocation9]   ;;  %s2896_s30 = smov [#allocation10]  }
  0x26   :  { %s47_s29 = sshll.u32 %s2895_s28, 4  ;;  %s61_s8 = sshll.u32 %s2896_s30, 4  ;;  %s48_s29 = int_to_ptr.vmem [resolvable:$true] %s47_s29  ;;  %s2968_s8 = int_to_ptr.vmem [resolvable:$true] %s61_s8 }
  0x27   :  { %s2815_s13 = scalar_lea.hbm %s3073_s3, 16384 }
  0x28   :  { %p2816_p2 = scmp.ne.s32.totalorder %s3073_s3, %s2815_s13  ;;  %p2819_p3 = scmp.lt.u32.totalorder %s2815_s13, %s3073_s3 }
  0x2a   :  { %p2821_p4 = pnand %p2819_p3, %p2816_p2 }
  0x2c   :  { %2824 = shalt.err (!%p2821_p4)
}
  0x2d   :  { %s2825_s0 = scalar_lea.vmem %s48_s29, 16384  ;;  %p2830_p6 = scmp.lt.s32.totalorder %s48_s29, %s48_s29 }
  0x2e   :  { %p2826_p5 = scmp.ne.s32.totalorder %s48_s29, %s2825_s0  ;;  %p2831_p7 = scmp.lt.s32.totalorder %s2825_s0, %s2825_s0 }
  0x30   :  { %p2832_p8 = por %p2831_p7, %p2830_p6 }
  0x32   :  { %p2833_p9 = pnand %p2832_p8, %p2826_p5 }
  0x34   :  { %2836 = shalt.err (!%p2833_p9)
}
  0x35   :  { %53 = dma.hbm_to_vmem [thread:$0]  %s3073_s3, 16384, %s48_s29, [#allocation8], %s2890_s11, %s2890_s11, %s2891_s12  }
  0x36   :  { %s2837_s22 = scalar_lea.hbm %s3075_s5, 8192 }
  0x37   :  { %p2838_p10 = scmp.ne.s32.totalorder %s3075_s5, %s2837_s22  ;;  %p2841_p11 = scmp.lt.u32.totalorder %s2837_s22, %s3075_s5 }
  0x39   :  { %p2843_p12 = pnand %p2841_p11, %p2838_p10 }
  0x3b   :  { %2846 = shalt.err (!%p2843_p12)
}
  0x3c   :  { %s2847_s28 = scalar_lea.vmem %s2968_s8, 8192  ;;  %p2852_p0 = scmp.lt.s32.totalorder %s2968_s8, %s2968_s8 }
  0x3d   :  { %p2848_p13 = scmp.ne.s32.totalorder %s2968_s8, %s2847_s28  ;;  %p2853_p1 = scmp.lt.s32.totalorder %s2847_s28, %s2847_s28 }
  0x3f   :  { %p2854_p2 = por %p2853_p1, %p2852_p0 }
  0x41   :  { %p2855_p3 = pnand %p2854_p2, %p2848_p13 }
  0x43   :  { %2858 = shalt.err (!%p2855_p3)
}
  0x44   :  { %67 = dma.hbm_to_vmem [thread:$0]  %s3075_s5, 8192, %s2968_s8, [#allocation11], %s2893_s1, %s2893_s1, %s2894_s25  }
  0x45   :  { %2881 = dma.done.wait [#allocation5], 256  }
  0x46   :  { %2882 = vsyncadd [#allocation5], 4294967040 }
  0x47   :  { %2883 = dma.done.wait [#allocation8], 24576  }
  0x48   :  { %2884 = vsyncadd [#allocation8], 4294942720 }
  0x49   :  { %2885 = dma.done.wait [#allocation11], 8192  }
  0x4a   :  { %2886 = vsyncadd [#allocation11], 4294959104  ;;  %v2384_v0 = vld [vmem:[#allocation7 + $0x4] ss:$16 sps:$4 sm:$0xff]   ;;  %v2386_v1 = vld [vmem:[#allocation7] ss:$16 sps:$4 sm:$0xff]  }
  0x4b   :  { %500 = vmatprep.subr.bf16.mxu1 %v2384_v0  ;;  %v2387_v2 = vld [vmem:[#allocation7 + $0x24] ss:$16 sps:$4 sm:$0xff]   ;;  %v2389_v3 = vld [vmem:[#allocation7 + $0x20] ss:$16 sps:$4 sm:$0xff]   ;;  %v2437_v42 = vld [vmem:[#allocation7 + $0xc] ss:$16 sps:$4 sm:$0xff]  }
  0x4c   :  { %501 = vmatpush1.bf16.msra.mxu1 %v2386_v1  ;;  %v2390_v4 = vld [vmem:[#allocation7 + $0x44] ss:$16 sps:$4 sm:$0xff]   ;;  %v2392_v5 = vld [vmem:[#allocation7 + $0x40] ss:$16 sps:$4 sm:$0xff]   ;;  %v2435_v46 = vld [vmem:[#allocation7 + $0x8] ss:$16 sps:$4 sm:$0xff]  }
  0x4d   :  { %502 = vmatprep.subr.bf16.mxu1 %v2387_v2  ;;  %v2393_v6 = vld [vmem:[#allocation7 + $0x64] ss:$16 sps:$4 sm:$0xff]   ;;  %v2395_v7 = vld [vmem:[#allocation7 + $0x60] ss:$16 sps:$4 sm:$0xff]   ;;  %v2440_v47 = vld [vmem:[#allocation7 + $0x2c] ss:$16 sps:$4 sm:$0xff]  }
  0x4e   :  { %v2396_v8 = vld [vmem:[#allocation7 + $0x84] ss:$16 sps:$4 sm:$0xff]   ;;  %v2398_v9 = vld [vmem:[#allocation7 + $0x80] ss:$16 sps:$4 sm:$0xff]   ;;  %v2438_v50 = vld [vmem:[#allocation7 + $0x28] ss:$16 sps:$4 sm:$0xff]  }
  0x4f   :  { %v2399_v10 = vld [vmem:[#allocation7 + $0xa4] ss:$16 sps:$4 sm:$0xff]   ;;  %v2401_v11 = vld [vmem:[#allocation7 + $0xa0] ss:$16 sps:$4 sm:$0xff]   ;;  %v2443_v51 = vld [vmem:[#allocation7 + $0x4c] ss:$16 sps:$4 sm:$0xff]  }
  0x50   :  { %503 = vmatpush1.bf16.msra.mxu1 %v2389_v3  ;;  %v2402_v12 = vld [vmem:[#allocation7 + $0xc4] ss:$16 sps:$4 sm:$0xff]   ;;  %v2404_v14 = vld [vmem:[#allocation7 + $0xc0] ss:$16 sps:$4 sm:$0xff]   ;;  %v2441_v54 = vld [vmem:[#allocation7 + $0x48] ss:$16 sps:$4 sm:$0xff]  }
  0x51   :  { %504 = vmatprep.subr.bf16.mxu1 %v2390_v4  ;;  %v3005_v13 = vld [vmem:[#allocation4 + $0x4] ss:$8 sps:$4 sm:$0xff]   ;;  %v2407_v16 = vld [vmem:[#allocation7 + $0xe0] ss:$16 sps:$4 sm:$0xff]   ;;  %v2444_v58 = vld [vmem:[#allocation7 + $0x68] ss:$16 sps:$4 sm:$0xff]  }
  0x52   :  { %v2405_v15 = vld [vmem:[#allocation7 + $0xe4] ss:$16 sps:$4 sm:$0xff]   ;;  %532 = vmatprep.mubr.bf16.mxu1 %v3005_v13  ;;  %v2410_v18 = vld [vmem:[#allocation7 + $0x100] ss:$16 sps:$4 sm:$0xff]   ;;  %v2446_v55 = vld [vmem:[#allocation7 + $0x6c] ss:$16 sps:$4 sm:$0xff]  }
  0x53   :  { %v2408_v17 = vld [vmem:[#allocation7 + $0x104] ss:$16 sps:$4 sm:$0xff]   ;;  %v2413_v20 = vld [vmem:[#allocation7 + $0x120] ss:$16 sps:$4 sm:$0xff]   ;;  %v2449_v59 = vld [vmem:[#allocation7 + $0x8c] ss:$16 sps:$4 sm:$0xff]  }
  0x54   :  { %505 = vmatpush1.bf16.msra.mxu1 %v2392_v5  ;;  %v2411_v19 = vld [vmem:[#allocation7 + $0x124] ss:$16 sps:$4 sm:$0xff]   ;;  %v2416_v22 = vld [vmem:[#allocation7 + $0x140] ss:$16 sps:$4 sm:$0xff]   ;;  %v2447_v62 = vld [vmem:[#allocation7 + $0x88] ss:$16 sps:$4 sm:$0xff]  }
  0x55   :  { %506 = vmatprep.subr.bf16.mxu1 %v2393_v6  ;;  %v2414_v21 = vld [vmem:[#allocation7 + $0x144] ss:$16 sps:$4 sm:$0xff]   ;;  %v2419_v24 = vld [vmem:[#allocation7 + $0x160] ss:$16 sps:$4 sm:$0xff]   ;;  %v2452_v63 = vld [vmem:[#allocation7 + $0xac] ss:$16 sps:$4 sm:$0xff]  }
  0x56   :  { %v2417_v23 = vld [vmem:[#allocation7 + $0x164] ss:$16 sps:$4 sm:$0xff]   ;;  %v2422_v27 = vld [vmem:[#allocation7 + $0x180] ss:$16 sps:$4 sm:$0xff]   ;;  %v2450_v1 = vld [vmem:[#allocation7 + $0xa8] ss:$16 sps:$4 sm:$0xff]  }
  0x57   :  { %v2420_v25 = vld [vmem:[#allocation7 + $0x184] ss:$16 sps:$4 sm:$0xff]   ;;  %v2488_v28 = vld [vmem:[#allocation9] ss:$16 sps:$4 sm:$0xff]   ;;  %v2455_v3 = vld [vmem:[#allocation7 + $0xcc] ss:$16 sps:$4 sm:$0xff]  }
  0x58   :  { %507 = vmatpush1.bf16.msra.mxu1 %v2395_v7  ;;  %v2483_v26 = vld [vmem:[#allocation9 + $0x4] ss:$16 sps:$4 sm:$0xff]   ;;  %v2494_v31 = vld [vmem:[#allocation9 + $0x20] ss:$16 sps:$4 sm:$0xff]   ;;  %v2453_v6 = vld [vmem:[#allocation7 + $0xc8] ss:$16 sps:$4 sm:$0xff]  }
  0x59   :  { %508 = vmatprep.subr.bf16.mxu1 %v2396_v8  ;;  %1396 = vmatprep.subr.bf16.mxu0 %v2483_v26  ;;  %v2489_v29 = vld [vmem:[#allocation9 + $0x24] ss:$16 sps:$4 sm:$0xff]   ;;  %v2425_v33 = vld [vmem:[#allocation7 + $0x1a0] ss:$16 sps:$4 sm:$0xff]   ;;  %v2458_v7 = vld [vmem:[#allocation7 + $0xec] ss:$16 sps:$4 sm:$0xff]  }
  0x5a   :  { %v2423_v30 = vld [vmem:[#allocation7 + $0x1a4] ss:$16 sps:$4 sm:$0xff]   ;;  %1397 = vmatpush1.bf16.msra.mxu0 %v2488_v28  ;;  %v2500_v35 = vld [vmem:[#allocation9 + $0x40] ss:$16 sps:$4 sm:$0xff]   ;;  %v2477_v26 = vld [vmem:[#allocation7 + $0x1c8] ss:$16 sps:$4 sm:$0xff]  }
  0x5b   :  { %1398 = vmatprep.subr.bf16.mxu0 %v2489_v29  ;;  %v2495_v32 = vld [vmem:[#allocation9 + $0x44] ss:$16 sps:$4 sm:$0xff]   ;;  %v2428_v37 = vld [vmem:[#allocation7 + $0x1c0] ss:$16 sps:$4 sm:$0xff]   ;;  %v2480_v28 = vld [vmem:[#allocation7 + $0x1e8] ss:$16 sps:$4 sm:$0xff]  }
  0x5c   :  { %509 = vmatpush1.bf16.msra.mxu1 %v2398_v9  ;;  %v2426_v34 = vld [vmem:[#allocation7 + $0x1c4] ss:$16 sps:$4 sm:$0xff]   ;;  %v2506_v39 = vld [vmem:[#allocation9 + $0x60] ss:$16 sps:$4 sm:$0xff]   ;;  %v2487_v29 = vld [vmem:[#allocation9 + $0xc] ss:$16 sps:$4 sm:$0xff]  }
  0x5d   :  { %510 = vmatprep.subr.bf16.mxu1 %v2399_v10  ;;  %v2501_v36 = vld [vmem:[#allocation9 + $0x64] ss:$16 sps:$4 sm:$0xff]   ;;  %v2431_v41 = vld [vmem:[#allocation7 + $0x1e0] ss:$16 sps:$4 sm:$0xff]   ;;  %v2456_v10 = vld [vmem:[#allocation7 + $0xe8] ss:$16 sps:$4 sm:$0xff]  }
  0x5e   :  { %1399 = vmatpush1.bf16.msra.mxu0 %v2494_v31  ;;  %v2429_v38 = vld [vmem:[#allocation7 + $0x1e4] ss:$16 sps:$4 sm:$0xff]   ;;  %v2512_v43 = vld [vmem:[#allocation9 + $0x80] ss:$16 sps:$4 sm:$0xff]   ;;  %v2493_v31 = vld [vmem:[#allocation9 + $0x2c] ss:$16 sps:$4 sm:$0xff]  }
  0x5f   :  { %1400 = vmatprep.subr.bf16.mxu0 %v2495_v32  ;;  %v2507_v40 = vld [vmem:[#allocation9 + $0x84] ss:$16 sps:$4 sm:$0xff]   ;;  %v3008_v45 = vld [vmem:[#allocation4] ss:$8 sps:$4 sm:$0xff]   ;;  %s2897_s8 = smov [#allocation12]  }
  0x60   :  { %511 = vmatpush1.bf16.msra.mxu1 %v2401_v11  ;;  %v2513_v44 = vld [vmem:[#allocation9 + $0xa4] ss:$16 sps:$4 sm:$0xff]   ;;  %v2518_v48 = vld [vmem:[#allocation9 + $0xa0] ss:$16 sps:$4 sm:$0xff]   ;;  %v2461_v11 = vld [vmem:[#allocation7 + $0x10c] ss:$16 sps:$4 sm:$0xff]  }
  0x61   :  { %512 = vmatprep.subr.bf16.mxu1 %v2402_v12  ;;  %v2519_v49 = vld [vmem:[#allocation9 + $0xc4] ss:$16 sps:$4 sm:$0xff]   ;;  %v2524_v52 = vld [vmem:[#allocation9 + $0xc0] ss:$16 sps:$4 sm:$0xff]   ;;  %v2491_v32 = vld [vmem:[#allocation9 + $0x28] ss:$16 sps:$4 sm:$0xff]  }
  0x62   :  { %1401 = vmatpush1.bf16.msra.mxu0 %v2500_v35  ;;  %v2525_v53 = vld [vmem:[#allocation9 + $0xe4] ss:$16 sps:$4 sm:$0xff]   ;;  %v2530_v56 = vld [vmem:[#allocation9 + $0xe0] ss:$16 sps:$4 sm:$0xff]   ;;  %v2505_v35 = vld [vmem:[#allocation9 + $0x6c] ss:$16 sps:$4 sm:$0xff]  }
  0x63   :  { %1402 = vmatprep.subr.bf16.mxu0 %v2501_v36  ;;  %v2531_v57 = vld [vmem:[#allocation9 + $0x104] ss:$16 sps:$4 sm:$0xff]   ;;  %v2536_v60 = vld [vmem:[#allocation9 + $0x100] ss:$16 sps:$4 sm:$0xff]   ;;  %v2503_v36 = vld [vmem:[#allocation9 + $0x68] ss:$16 sps:$4 sm:$0xff]  }
  0x64   :  { %513 = vmatpush1.bf16.msra.mxu1 %v2404_v14  ;;  %v2537_v61 = vld [vmem:[#allocation9 + $0x124] ss:$16 sps:$4 sm:$0xff]   ;;  %v2542_v0 = vld [vmem:[#allocation9 + $0x120] ss:$16 sps:$4 sm:$0xff]   ;;  %v2459_v14 = vld [vmem:[#allocation7 + $0x108] ss:$16 sps:$4 sm:$0xff]  }
  0x65   :  { %514 = vmatprep.subr.bf16.mxu1 %v2405_v15  ;;  %v2543_v2 = vld [vmem:[#allocation9 + $0x144] ss:$16 sps:$4 sm:$0xff]   ;;  %v2548_v4 = vld [vmem:[#allocation9 + $0x140] ss:$16 sps:$4 sm:$0xff]   ;;  %v2464_v15 = vld [vmem:[#allocation7 + $0x12c] ss:$16 sps:$4 sm:$0xff]  }
  0x66   :  { %1403 = vmatpush1.bf16.msra.mxu0 %v2506_v39  ;;  %v2549_v5 = vld [vmem:[#allocation9 + $0x164] ss:$16 sps:$4 sm:$0xff]   ;;  %v2554_v8 = vld [vmem:[#allocation9 + $0x160] ss:$16 sps:$4 sm:$0xff]   ;;  %v2517_v39 = vld [vmem:[#allocation9 + $0xac] ss:$16 sps:$4 sm:$0xff]  }
  0x67   :  { %1404 = vmatprep.subr.bf16.mxu0 %v2507_v40  ;;  %v2555_v9 = vld [vmem:[#allocation9 + $0x184] ss:$16 sps:$4 sm:$0xff]   ;;  %v2560_v12 = vld [vmem:[#allocation9 + $0x180] ss:$16 sps:$4 sm:$0xff]   ;;  %v2515_v40 = vld [vmem:[#allocation9 + $0xa8] ss:$16 sps:$4 sm:$0xff]  }
  0x68   :  { %515 = vmatpush1.bf16.msra.mxu1 %v2407_v16  ;;  %v2462_v16 = vld [vmem:[#allocation7 + $0x128] ss:$16 sps:$4 sm:$0xff]   ;;  %s2079_s9 = sshll.u32 %s2897_s8, 4  ;;  %s2080_s9 = int_to_ptr.vmem [resolvable:$true] %s2079_s9 }
  0x69   :  { %516 = vmatprep.subr.bf16.mxu1 %v2408_v17  ;;  %v2467_v17 = vld [vmem:[#allocation7 + $0x14c] ss:$16 sps:$4 sm:$0xff]   ;;  %p2864_p5 = scmp.lt.s32.totalorder %s2080_s9, %s2080_s9 }
  0x6a   :  { %1405 = vmatpush1.bf16.msra.mxu0 %v2512_v43  ;;  %v2567_v43 = vld [vmem:[#allocation9 + $0x1c4] ss:$16 sps:$4 sm:$0xff]  }
  0x6b   :  { %1406 = vmatprep.subr.bf16.mxu0 %v2513_v44  ;;  %v2521_v44 = vld [vmem:[#allocation9 + $0xc8] ss:$16 sps:$4 sm:$0xff]  }
  0x6c   :  { %517 = vmatpush1.bf16.msra.mxu1 %v2410_v18  ;;  %v2465_v18 = vld [vmem:[#allocation7 + $0x148] ss:$16 sps:$4 sm:$0xff]  }
  0x6d   :  { %518 = vmatprep.subr.bf16.mxu1 %v2411_v19  ;;  %v2470_v19 = vld [vmem:[#allocation7 + $0x16c] ss:$16 sps:$4 sm:$0xff]  }
  0x6e   :  { %1407 = vmatpush1.bf16.msra.mxu0 %v2518_v48  ;;  %v2527_v48 = vld [vmem:[#allocation9 + $0xe8] ss:$16 sps:$4 sm:$0xff]  }
  0x6f   :  { %1408 = vmatprep.subr.bf16.mxu0 %v2519_v49  ;;  %v2578_v49 = vld [vmem:[#allocation9 + $0x1e0] ss:$16 sps:$4 sm:$0xff]  }
  0x70   :  { %519 = vmatpush1.bf16.msra.mxu1 %v2413_v20  ;;  %v2468_v20 = vld [vmem:[#allocation7 + $0x168] ss:$16 sps:$4 sm:$0xff]  }
  0x71   :  { %520 = vmatprep.subr.bf16.mxu1 %v2414_v21  ;;  %v2473_v21 = vld [vmem:[#allocation7 + $0x18c] ss:$16 sps:$4 sm:$0xff]  }
  0x72   :  { %1409 = vmatpush1.bf16.msra.mxu0 %v2524_v52  ;;  %v2533_v52 = vld [vmem:[#allocation9 + $0x108] ss:$16 sps:$4 sm:$0xff]  }
  0x73   :  { %1410 = vmatprep.subr.bf16.mxu0 %v2525_v53  ;;  %v2541_v53 = vld [vmem:[#allocation9 + $0x12c] ss:$16 sps:$4 sm:$0xff]  }
  0x74   :  { %521 = vmatpush1.bf16.msra.mxu1 %v2416_v22  ;;  %v2471_v22 = vld [vmem:[#allocation7 + $0x188] ss:$16 sps:$4 sm:$0xff]  }
  0x75   :  { %522 = vmatprep.subr.bf16.mxu1 %v2417_v23  ;;  %v2476_v23 = vld [vmem:[#allocation7 + $0x1ac] ss:$16 sps:$4 sm:$0xff]  }
  0x76   :  { %1411 = vmatpush1.bf16.msra.mxu0 %v2530_v56  ;;  %v2545_v56 = vld [vmem:[#allocation9 + $0x148] ss:$16 sps:$4 sm:$0xff]  }
  0x77   :  { %1412 = vmatprep.subr.bf16.mxu0 %v2531_v57  ;;  %v2553_v57 = vld [vmem:[#allocation9 + $0x16c] ss:$16 sps:$4 sm:$0xff]  }
  0x78   :  { %523 = vmatpush1.bf16.msra.mxu1 %v2419_v24  ;;  %v2474_v24 = vld [vmem:[#allocation7 + $0x1a8] ss:$16 sps:$4 sm:$0xff]  }
  0x79   :  { %524 = vmatprep.subr.bf16.mxu1 %v2420_v25  ;;  %v2479_v25 = vld [vmem:[#allocation7 + $0x1cc] ss:$16 sps:$4 sm:$0xff]  }
  0x7a   :  { %1413 = vmatpush1.bf16.msra.mxu0 %v2536_v60  ;;  %v2557_v60 = vld [vmem:[#allocation9 + $0x188] ss:$16 sps:$4 sm:$0xff]  }
  0x7b   :  { %1414 = vmatprep.subr.bf16.mxu0 %v2537_v61  ;;  %v2565_v61 = vld [vmem:[#allocation9 + $0x1ac] ss:$16 sps:$4 sm:$0xff]  }
  0x7c   :  { %525 = vmatpush1.bf16.msra.mxu1 %v2422_v27  ;;  %v2482_v27 = vld [vmem:[#allocation7 + $0x1ec] ss:$16 sps:$4 sm:$0xff]  }
  0x7d   :  { %526 = vmatprep.subr.bf16.mxu1 %v2423_v30  ;;  %v2485_v30 = vld [vmem:[#allocation9 + $0x8] ss:$16 sps:$4 sm:$0xff]  }
  0x7e   :  { %1415 = vmatpush1.bf16.msra.mxu0 %v2542_v0  ;;  %v2569_v0 = vld [vmem:[#allocation9 + $0x1c8] ss:$16 sps:$4 sm:$0xff]  }
  0x7f   :  { %1416 = vmatprep.subr.bf16.mxu0 %v2543_v2  ;;  %v2575_v2 = vld [vmem:[#allocation9 + $0x1e8] ss:$16 sps:$4 sm:$0xff]  }
  0x80   :  { %527 = vmatpush1.bf16.msra.mxu1 %v2425_v33  ;;  %v2499_v33 = vld [vmem:[#allocation9 + $0x4c] ss:$16 sps:$4 sm:$0xff]  }
  0x81   :  { %528 = vmatprep.subr.bf16.mxu1 %v2426_v34  ;;  %v2497_v34 = vld [vmem:[#allocation9 + $0x48] ss:$16 sps:$4 sm:$0xff]  }
  0x82   :  { %1417 = vmatpush1.bf16.msra.mxu0 %v2548_v4  ;;  %v150_v4 = vlaneseq }
  0x83   :  { %1418 = vmatprep.subr.bf16.mxu0 %v2549_v5 }
  0x84   :  { %529 = vmatpush1.bf16.msra.mxu1 %v2428_v37  ;;  %v2511_v37 = vld [vmem:[#allocation9 + $0x8c] ss:$16 sps:$4 sm:$0xff]   ;;  %v3013_v5 = vshrl.u32 %v150_v4, 7 }
  0x85   :  { %530 = vmatprep.subr.bf16.mxu1 %v2429_v38  ;;  %v2509_v38 = vld [vmem:[#allocation9 + $0x88] ss:$16 sps:$4 sm:$0xff]   ;;  %v2650_v4 = vld [vmem:[#allocation9 + $0x36c] ss:$16 sps:$4 sm:$0xff]  }
  0x86   :  { %1419 = vmatpush1.bf16.msra.mxu0 %v2554_v8  ;;  %v3024_v8 = vsub.s32 1, %v3013_v5 }
  0x87   :  { %1420 = vmatprep.subr.bf16.mxu0 %v2555_v9 }
  0x88   :  { %531 = vmatpush1.bf16.msra.mxu1 %v2431_v41  ;;  %v2566_v41 = vld [vmem:[#allocation9 + $0x1a0] ss:$16 sps:$4 sm:$0xff]  }
  0x89   :  { %543 = vmatprep.subr.bf16.mxu1 %v2437_v42  ;;  %v2523_v42 = vld [vmem:[#allocation9 + $0xcc] ss:$16 sps:$4 sm:$0xff]  }
  0x8a   :  { %1421 = vmatpush1.bf16.msra.mxu0 %v2560_v12 }
  0x8b   :  { %533 = vmatmul.mubr.bf16.vlgmr.msra.gmra.mrb[0].mxu1 %v3008_v45 }
  0x8c   :  { %544 = vmatpush1.bf16.msra.mxu1 %v2435_v46  ;;  %575 = vmatprep.mubr.bf16.mxu1 %v3005_v13  ;;  %v2561_v13 = vld [vmem:[#allocation9 + $0x1a4] ss:$16 sps:$4 sm:$0xff]   ;;  %v2529_v46 = vld [vmem:[#allocation9 + $0xec] ss:$16 sps:$4 sm:$0xff]  }
  0x8d   :  { %545 = vmatprep.subr.bf16.mxu1 %v2440_v47  ;;  %1422 = vmatprep.subr.bf16.mxu0 %v2561_v13  ;;  %v2573_v47 = vld [vmem:[#allocation9 + $0x1e4] ss:$16 sps:$4 sm:$0xff]  }
  0x8e   :  { %1423 = vmatpush1.bf16.msra.mxu0 %v2566_v41  ;;  %v2603_v41 = vld [vmem:[#allocation9 + $0x280] ss:$16 sps:$4 sm:$0xff]  }
  0x8f   :  { %1424 = vmatprep.subr.bf16.mxu0 %v2567_v43  ;;  %v2611_v43 = vld [vmem:[#allocation9 + $0x2a4] ss:$16 sps:$4 sm:$0xff]  }
  0x90   :  { %546 = vmatpush1.bf16.msra.mxu1 %v2438_v50  ;;  %v2535_v50 = vld [vmem:[#allocation9 + $0x10c] ss:$16 sps:$4 sm:$0xff]  }
  0x91   :  { %547 = vmatprep.subr.bf16.mxu1 %v2443_v51  ;;  %v2581_v51 = vld [vmem:[#allocation9 + $0x204] ss:$16 sps:$4 sm:$0xff]  }
  0x94   :  { %548 = vmatpush1.bf16.msra.mxu1 %v2441_v54  ;;  %v2539_v54 = vld [vmem:[#allocation9 + $0x128] ss:$16 sps:$4 sm:$0xff]  }
  0x95   :  { %549 = vmatprep.subr.bf16.mxu1 %v2446_v55  ;;  %v2547_v55 = vld [vmem:[#allocation9 + $0x14c] ss:$16 sps:$4 sm:$0xff]  }
  0x98   :  { %550 = vmatpush1.bf16.msra.mxu1 %v2444_v58  ;;  %v2551_v58 = vld [vmem:[#allocation9 + $0x168] ss:$16 sps:$4 sm:$0xff]  }
  0x99   :  { %551 = vmatprep.subr.bf16.mxu1 %v2449_v59  ;;  %v2559_v59 = vld [vmem:[#allocation9 + $0x18c] ss:$16 sps:$4 sm:$0xff]  }
  0x9c   :  { %552 = vmatpush1.bf16.msra.mxu1 %v2447_v62  ;;  %v2563_v62 = vld [vmem:[#allocation9 + $0x1a8] ss:$16 sps:$4 sm:$0xff]  }
  0x9d   :  { %553 = vmatprep.subr.bf16.mxu1 %v2452_v63  ;;  %v2571_v63 = vld [vmem:[#allocation9 + $0x1cc] ss:$16 sps:$4 sm:$0xff]  }
  0xa0   :  { %554 = vmatpush1.bf16.msra.mxu1 %v2450_v1  ;;  %v2577_v1 = vld [vmem:[#allocation9 + $0x1ec] ss:$16 sps:$4 sm:$0xff]  }
  0xa1   :  { %555 = vmatprep.subr.bf16.mxu1 %v2455_v3  ;;  %v2584_v3 = vld [vmem:[#allocation9 + $0x20c] ss:$16 sps:$4 sm:$0xff]  }
  0xa4   :  { %556 = vmatpush1.bf16.msra.mxu1 %v2453_v6  ;;  %v3016_v6 = vsub.s32 0, %v3013_v5 }
  0xa5   :  { %557 = vmatprep.subr.bf16.mxu1 %v2458_v7  ;;  %v3021_v7 = vld [vmem:[%s3072_s2] sm:$0xf] }
  0xa6   :  { %v153_v9 = vrot.slane %v3021_v7, %v3016_v6 }
  0xa8   :  { %558 = vmatpush1.bf16.msra.mxu1 %v2456_v10  ;;  %v157_v10 = vrot.slane %v3021_v7, %v3024_v8 }
  0xa9   :  { %559 = vmatprep.subr.bf16.mxu1 %v2461_v11 }
  0xac   :  { %560 = vmatpush1.bf16.msra.mxu1 %v2459_v14 }
  0xad   :  { %561 = vmatprep.subr.bf16.mxu1 %v2464_v15 }
  0xb0   :  { %562 = vmatpush1.bf16.msra.mxu1 %v2462_v16 }
  0xb1   :  { %563 = vmatprep.subr.bf16.mxu1 %v2467_v17 }
  0xb4   :  { %564 = vmatpush1.bf16.msra.mxu1 %v2465_v18 }
  0xb5   :  { %565 = vmatprep.subr.bf16.mxu1 %v2470_v19 }
  0xb8   :  { %566 = vmatpush1.bf16.msra.mxu1 %v2468_v20 }
  0xb9   :  { %567 = vmatprep.subr.bf16.mxu1 %v2473_v21 }
  0xbc   :  { %568 = vmatpush1.bf16.msra.mxu1 %v2471_v22 }
  0xbd   :  { %569 = vmatprep.subr.bf16.mxu1 %v2476_v23 }
  0xc0   :  { %570 = vmatpush1.bf16.msra.mxu1 %v2474_v24 }
  0xc1   :  { %571 = vmatprep.subr.bf16.mxu1 %v2479_v25  ;;  %v2579_v25 = vld [vmem:[#allocation9 + $0x200] ss:$16 sps:$4 sm:$0xff]  }
  0xc4   :  { %572 = vmatpush1.bf16.msra.mxu1 %v2477_v26  ;;  %v2582_v26 = vld [vmem:[#allocation9 + $0x208] ss:$16 sps:$4 sm:$0xff]  }
  0xc5   :  { %573 = vmatprep.subr.bf16.mxu1 %v2482_v27  ;;  %v2587_v27 = vld [vmem:[#allocation9 + $0x224] ss:$16 sps:$4 sm:$0xff]  }
  0xc8   :  { %574 = vmatpush1.bf16.msra.mxu1 %v2480_v28  ;;  %v2590_v28 = vld [vmem:[#allocation9 + $0x22c] ss:$16 sps:$4 sm:$0xff]  }
  0xc9   :  { %1482 = vmatprep.subr.bf16.mxu1 %v2487_v29  ;;  %v2585_v29 = vld [vmem:[#allocation9 + $0x220] ss:$16 sps:$4 sm:$0xff]  }
  0xcb   :  { %576 = vmatmul.mubr.bf16.vlgmr.msra.gmra.mrb[4].mxu1 %v3008_v45  ;;  %v2572_v45 = vld [vmem:[#allocation9 + $0x1c0] ss:$16 sps:$4 sm:$0xff]  }
  0xcc   :  { %1483 = vmatpush1.bf16.msra.mxu1 %v2485_v30  ;;  %1425 = vmatpush1.bf16.msra.mxu0 %v2572_v45  ;;  %v2588_v30 = vld [vmem:[#allocation9 + $0x228] ss:$16 sps:$4 sm:$0xff]   ;;  %v2609_v45 = vld [vmem:[#allocation9 + $0x2a0] ss:$16 sps:$4 sm:$0xff]  }
  0xcd   :  { %1484 = vmatprep.subr.bf16.mxu1 %v2493_v31  ;;  %1426 = vmatprep.subr.bf16.mxu0 %v2573_v47  ;;  %v2593_v31 = vld [vmem:[#allocation9 + $0x244] ss:$16 sps:$4 sm:$0xff]  }
  0xce   :  { %v2617_v47 = vld [vmem:[#allocation9 + $0x2c4] ss:$16 sps:$4 sm:$0xff]  }
  0xd0   :  { %1485 = vmatpush1.bf16.msra.mxu1 %v2491_v32  ;;  %1427 = vmatpush1.bf16.msra.mxu0 %v2578_v49  ;;  %v2596_v32 = vld [vmem:[#allocation9 + $0x24c] ss:$16 sps:$4 sm:$0xff]   ;;  %v2615_v49 = vld [vmem:[#allocation9 + $0x2c0] ss:$16 sps:$4 sm:$0xff]  }
  0xd1   :  { %1486 = vmatprep.subr.bf16.mxu1 %v2499_v33  ;;  %1439 = vmatprep.subr.bf16.mxu0 %v2581_v51  ;;  %v2591_v33 = vld [vmem:[#allocation9 + $0x240] ss:$16 sps:$4 sm:$0xff]   ;;  %v2623_v51 = vld [vmem:[#allocation9 + $0x2e4] ss:$16 sps:$4 sm:$0xff]  }
  0xd4   :  { %1487 = vmatpush1.bf16.msra.mxu1 %v2497_v34  ;;  %v2594_v34 = vld [vmem:[#allocation9 + $0x248] ss:$16 sps:$4 sm:$0xff]  }
  0xd5   :  { %1488 = vmatprep.subr.bf16.mxu1 %v2505_v35  ;;  %v2599_v35 = vld [vmem:[#allocation9 + $0x264] ss:$16 sps:$4 sm:$0xff]  }
  0xd8   :  { %1489 = vmatpush1.bf16.msra.mxu1 %v2503_v36  ;;  %v2602_v36 = vld [vmem:[#allocation9 + $0x26c] ss:$16 sps:$4 sm:$0xff]  }
  0xd9   :  { %1490 = vmatprep.subr.bf16.mxu1 %v2511_v37  ;;  %v2597_v37 = vld [vmem:[#allocation9 + $0x260] ss:$16 sps:$4 sm:$0xff]  }
  0xdc   :  { %1491 = vmatpush1.bf16.msra.mxu1 %v2509_v38  ;;  %v2600_v38 = vld [vmem:[#allocation9 + $0x268] ss:$16 sps:$4 sm:$0xff]  }
  0xdd   :  { %1492 = vmatprep.subr.bf16.mxu1 %v2517_v39  ;;  %v2605_v39 = vld [vmem:[#allocation9 + $0x284] ss:$16 sps:$4 sm:$0xff]  }
  0xe0   :  { %1493 = vmatpush1.bf16.msra.mxu1 %v2515_v40  ;;  %v2608_v40 = vld [vmem:[#allocation9 + $0x28c] ss:$16 sps:$4 sm:$0xff]  }
  0xe1   :  { %1494 = vmatprep.subr.bf16.mxu1 %v2523_v42  ;;  %v2606_v42 = vld [vmem:[#allocation9 + $0x288] ss:$16 sps:$4 sm:$0xff]  }
  0xe4   :  { %1495 = vmatpush1.bf16.msra.mxu1 %v2521_v44  ;;  %v2614_v44 = vld [vmem:[#allocation9 + $0x2ac] ss:$16 sps:$4 sm:$0xff]  }
  0xe5   :  { %1496 = vmatprep.subr.bf16.mxu1 %v2529_v46  ;;  %v2612_v46 = vld [vmem:[#allocation9 + $0x2a8] ss:$16 sps:$4 sm:$0xff]  }
  0xe8   :  { %1497 = vmatpush1.bf16.msra.mxu1 %v2527_v48  ;;  %v2620_v48 = vld [vmem:[#allocation9 + $0x2cc] ss:$16 sps:$4 sm:$0xff]  }
  0xe9   :  { %1498 = vmatprep.subr.bf16.mxu1 %v2535_v50  ;;  %v2618_v50 = vld [vmem:[#allocation9 + $0x2c8] ss:$16 sps:$4 sm:$0xff]  }
  0xec   :  { %1499 = vmatpush1.bf16.msra.mxu1 %v2533_v52  ;;  %v2626_v52 = vld [vmem:[#allocation9 + $0x2ec] ss:$16 sps:$4 sm:$0xff]  }
  0xed   :  { %1500 = vmatprep.subr.bf16.mxu1 %v2541_v53  ;;  %v2621_v53 = vld [vmem:[#allocation9 + $0x2e0] ss:$16 sps:$4 sm:$0xff]  }
  0xf0   :  { %1501 = vmatpush1.bf16.msra.mxu1 %v2539_v54  ;;  %v2624_v54 = vld [vmem:[#allocation9 + $0x2e8] ss:$16 sps:$4 sm:$0xff]  }
  0xf1   :  { %1502 = vmatprep.subr.bf16.mxu1 %v2547_v55  ;;  %v2629_v55 = vld [vmem:[#allocation9 + $0x304] ss:$16 sps:$4 sm:$0xff]  }
  0xf4   :  { %1503 = vmatpush1.bf16.msra.mxu1 %v2545_v56  ;;  %v2632_v56 = vld [vmem:[#allocation9 + $0x30c] ss:$16 sps:$4 sm:$0xff]  }
  0xf5   :  { %1504 = vmatprep.subr.bf16.mxu1 %v2553_v57  ;;  %v2627_v57 = vld [vmem:[#allocation9 + $0x300] ss:$16 sps:$4 sm:$0xff]  }
  0xf8   :  { %1505 = vmatpush1.bf16.msra.mxu1 %v2551_v58  ;;  %v2630_v58 = vld [vmem:[#allocation9 + $0x308] ss:$16 sps:$4 sm:$0xff]  }
  0xf9   :  { %1506 = vmatprep.subr.bf16.mxu1 %v2559_v59  ;;  %v2635_v59 = vld [vmem:[#allocation9 + $0x324] ss:$16 sps:$4 sm:$0xff]  }
  0xfc   :  { %1507 = vmatpush1.bf16.msra.mxu1 %v2557_v60  ;;  %v2638_v60 = vld [vmem:[#allocation9 + $0x32c] ss:$16 sps:$4 sm:$0xff]  }
  0xfd   :  { %1508 = vmatprep.subr.bf16.mxu1 %v2565_v61  ;;  %v2633_v61 = vld [vmem:[#allocation9 + $0x320] ss:$16 sps:$4 sm:$0xff]  }
 0x100   :  { %1509 = vmatpush1.bf16.msra.mxu1 %v2563_v62  ;;  %v2636_v62 = vld [vmem:[#allocation9 + $0x328] ss:$16 sps:$4 sm:$0xff]  }
 0x101   :  { %1510 = vmatprep.subr.bf16.mxu1 %v2571_v63  ;;  %v2641_v63 = vld [vmem:[#allocation9 + $0x344] ss:$16 sps:$4 sm:$0xff]  }
 0x104   :  { %1511 = vmatpush1.bf16.msra.mxu1 %v2569_v0  ;;  %v2644_v0 = vld [vmem:[#allocation9 + $0x34c] ss:$16 sps:$4 sm:$0xff]  }
 0x105   :  { %1512 = vmatprep.subr.bf16.mxu1 %v2577_v1  ;;  %v2639_v1 = vld [vmem:[#allocation9 + $0x340] ss:$16 sps:$4 sm:$0xff]  }
 0x108   :  { %1513 = vmatpush1.bf16.msra.mxu1 %v2575_v2  ;;  %v2642_v2 = vld [vmem:[#allocation9 + $0x348] ss:$16 sps:$4 sm:$0xff]  }
 0x109   :  { %1525 = vmatprep.subr.bf16.mxu1 %v2584_v3  ;;  %v2647_v3 = vld [vmem:[#allocation9 + $0x364] ss:$16 sps:$4 sm:$0xff]  }
 0x15e   :  { %v534_v11 = vpop.f32.mrb[0].mxu1 }
 0x15f   :  { %v535_v12 = vadd.f32 %v534_v11, %v153_v9  ;;  %v536_v13 = vpop.f32.mrb[1].mxu1  ;;  %v2653_v11 = vld [vmem:[#allocation9 + $0x384] ss:$16 sps:$4 sm:$0xff]  }
 0x160   :  { %v537_v14 = vadd.f32 %v536_v13, %v157_v10  ;;  %v538_v15 = vpop.f32.mrb[2].mxu1  ;;  %v2651_v13 = vld [vmem:[#allocation9 + $0x380] ss:$16 sps:$4 sm:$0xff]  }
 0x161   :  { %v586_v16 = vmax.f32 %v535_v12, 0.0  ;;  %v539_v17 = vadd.f32 %v538_v15, %v153_v9  ;;  %v540_v18 = vpop.f32.mrb[3].mxu1  ;;  %v2645_v9 = vld [vmem:[#allocation9 + $0x360] ss:$16 sps:$4 sm:$0xff]   ;;  %v2656_v12 = vld [vmem:[#allocation9 + $0x38c] ss:$16 sps:$4 sm:$0xff]  }
 0x162   :  { %v541_v19 = vadd.f32 %v540_v18, %v157_v10  ;;  %v587_v21 = vmax.f32 %v537_v14, 0.0  ;;  %v2648_v10 = vld [vmem:[#allocation9 + $0x368] ss:$16 sps:$4 sm:$0xff]   ;;  %v2659_v15 = vld [vmem:[#allocation9 + $0x3a4] ss:$16 sps:$4 sm:$0xff]   ;;  %v164_v18 = vsub.s32 3, %v3013_v5 }
 0x163   :  { %v590_v20 = vmax.f32 %v539_v17, 0.0  ;;  %v2654_v14 = vld [vmem:[#allocation9 + $0x388] ss:$16 sps:$4 sm:$0xff]   ;;  %v160_v17 = vsub.s32 2, %v3013_v5 }
 0x164   :  { %v591_v22 = vmax.f32 %v541_v19, 0.0  ;;  %v2657_v19 = vld [vmem:[#allocation9 + $0x3a0] ss:$16 sps:$4 sm:$0xff]  }
 0x165   :  { %v594_v23 = vpack.c.bf16 %v590_v20, %v586_v16  ;;  %v2662_v16 = vld [vmem:[#allocation9 + $0x3ac] ss:$16 sps:$4 sm:$0xff]   ;;  %v2660_v20 = vld [vmem:[#allocation9 + $0x3a8] ss:$16 sps:$4 sm:$0xff]  }
 0x166   :  { %v595_v24 = vpack.c.bf16 %v591_v22, %v587_v21  ;;  %v161_v21 = vrot.slane %v3021_v7, %v160_v17  ;;  %v2665_v22 = vld [vmem:[#allocation9 + $0x3c4] ss:$16 sps:$4 sm:$0xff]  }
 0x168   :  { %1428 = vmatprep.mubr.bf16.mxu0 %v595_v24  ;;  %1514 = vmatprep.mubr.bf16.mxu1 %v595_v24  ;;  %v165_v24 = vrot.slane %v3021_v7, %v164_v18  ;;  %v2672_v7 = vld [vmem:[#allocation9 + $0x3e8] ss:$16 sps:$4 sm:$0xff]  }
 0x169   :  { %1429 = vmatmul.mubr.bf16.vlgmr.msra.gmra.mrb[0].mxu0 %v594_v23  ;;  %1515 = vmatmul.mubr.bf16.vlgmr.msra.gmra.mrb[8].mxu1 %v594_v23  ;;  %v2668_v23 = vld [vmem:[#allocation9 + $0x3cc] ss:$16 sps:$4 sm:$0xff]  }
 0x16a   :  { %1440 = vmatpush1.bf16.msra.mxu0 %v2579_v25  ;;  %1526 = vmatpush1.bf16.msra.mxu1 %v2582_v26  ;;  %v2663_v26 = vld [vmem:[#allocation9 + $0x3c0] ss:$16 sps:$4 sm:$0xff]  }
 0x16b   :  { %1441 = vmatprep.subr.bf16.mxu0 %v2587_v27  ;;  %1527 = vmatprep.subr.bf16.mxu1 %v2590_v28  ;;  %v2666_v27 = vld [vmem:[#allocation9 + $0x3c8] ss:$16 sps:$4 sm:$0xff]  }
 0x16e   :  { %1442 = vmatpush1.bf16.msra.mxu0 %v2585_v29  ;;  %1528 = vmatpush1.bf16.msra.mxu1 %v2588_v30  ;;  %v2671_v30 = vld [vmem:[#allocation9 + $0x3e4] ss:$16 sps:$4 sm:$0xff]  }
 0x16f   :  { %1443 = vmatprep.subr.bf16.mxu0 %v2593_v31  ;;  %1529 = vmatprep.subr.bf16.mxu1 %v2596_v32  ;;  %v2674_v31 = vld [vmem:[#allocation9 + $0x3ec] ss:$16 sps:$4 sm:$0xff]  }
 0x172   :  { %1444 = vmatpush1.bf16.msra.mxu0 %v2591_v33  ;;  %1530 = vmatpush1.bf16.msra.mxu1 %v2594_v34 }
 0x173   :  { %1445 = vmatprep.subr.bf16.mxu0 %v2599_v35  ;;  %1531 = vmatprep.subr.bf16.mxu1 %v2602_v36 }
 0x176   :  { %1446 = vmatpush1.bf16.msra.mxu0 %v2597_v37  ;;  %1532 = vmatpush1.bf16.msra.mxu1 %v2600_v38  ;;  %v2669_v37 = vld [vmem:[#allocation9 + $0x3e0] ss:$16 sps:$4 sm:$0xff]  }
 0x177   :  { %1447 = vmatprep.subr.bf16.mxu0 %v2605_v39  ;;  %1533 = vmatprep.subr.bf16.mxu1 %v2608_v40  ;;  %v2677_v40 = vld [vmem:[#allocation10 + $0x4] ss:$8 sps:$4 sm:$0xff]  }
 0x17a   :  { %1448 = vmatpush1.bf16.msra.mxu0 %v2603_v41  ;;  %1534 = vmatpush1.bf16.msra.mxu1 %v2606_v42 }
 0x17b   :  { %1449 = vmatprep.subr.bf16.mxu0 %v2611_v43  ;;  %1535 = vmatprep.subr.bf16.mxu1 %v2614_v44 }
 0x17e   :  { %1450 = vmatpush1.bf16.msra.mxu0 %v2609_v45  ;;  %1536 = vmatpush1.bf16.msra.mxu1 %v2612_v46  ;;  %v2675_v45 = vld [vmem:[#allocation10] ss:$8 sps:$4 sm:$0xff]   ;;  %v2680_v46 = vld [vmem:[#allocation10 + $0x14] ss:$8 sps:$4 sm:$0xff]  }
 0x17f   :  { %1451 = vmatprep.subr.bf16.mxu0 %v2617_v47  ;;  %1537 = vmatprep.subr.bf16.mxu1 %v2620_v48  ;;  %v2678_v47 = vld [vmem:[#allocation10 + $0x10] ss:$8 sps:$4 sm:$0xff]   ;;  %v2683_v48 = vld [vmem:[#allocation10 + $0x24] ss:$8 sps:$4 sm:$0xff]  }
 0x182   :  { %1452 = vmatpush1.bf16.msra.mxu0 %v2615_v49  ;;  %1538 = vmatpush1.bf16.msra.mxu1 %v2618_v50  ;;  %v2681_v49 = vld [vmem:[#allocation10 + $0x20] ss:$8 sps:$4 sm:$0xff]   ;;  %v2686_v50 = vld [vmem:[#allocation10 + $0x34] ss:$8 sps:$4 sm:$0xff]  }
 0x183   :  { %1453 = vmatprep.subr.bf16.mxu0 %v2623_v51  ;;  %1539 = vmatprep.subr.bf16.mxu1 %v2626_v52  ;;  %v2684_v51 = vld [vmem:[#allocation10 + $0x30] ss:$8 sps:$4 sm:$0xff]   ;;  %v2689_v52 = vld [vmem:[#allocation10 + $0x44] ss:$8 sps:$4 sm:$0xff]  }
 0x186   :  { %1454 = vmatpush1.bf16.msra.mxu0 %v2621_v53  ;;  %1540 = vmatpush1.bf16.msra.mxu1 %v2624_v54  ;;  %v2687_v53 = vld [vmem:[#allocation10 + $0x40] ss:$8 sps:$4 sm:$0xff]   ;;  %v2692_v54 = vld [vmem:[#allocation10 + $0x54] ss:$8 sps:$4 sm:$0xff]  }
 0x187   :  { %1455 = vmatprep.subr.bf16.mxu0 %v2629_v55  ;;  %1541 = vmatprep.subr.bf16.mxu1 %v2632_v56  ;;  %v2690_v55 = vld [vmem:[#allocation10 + $0x50] ss:$8 sps:$4 sm:$0xff]   ;;  %v2695_v56 = vld [vmem:[#allocation10 + $0x64] ss:$8 sps:$4 sm:$0xff]  }
 0x18a   :  { %1456 = vmatpush1.bf16.msra.mxu0 %v2627_v57  ;;  %1542 = vmatpush1.bf16.msra.mxu1 %v2630_v58  ;;  %v2693_v57 = vld [vmem:[#allocation10 + $0x60] ss:$8 sps:$4 sm:$0xff]   ;;  %v2698_v58 = vld [vmem:[#allocation10 + $0x74] ss:$8 sps:$4 sm:$0xff]  }
 0x18b   :  { %1457 = vmatprep.subr.bf16.mxu0 %v2635_v59  ;;  %1543 = vmatprep.subr.bf16.mxu1 %v2638_v60  ;;  %v2696_v59 = vld [vmem:[#allocation10 + $0x70] ss:$8 sps:$4 sm:$0xff]   ;;  %v2701_v60 = vld [vmem:[#allocation10 + $0x84] ss:$8 sps:$4 sm:$0xff]  }
 0x18e   :  { %1458 = vmatpush1.bf16.msra.mxu0 %v2633_v61  ;;  %1544 = vmatpush1.bf16.msra.mxu1 %v2636_v62  ;;  %v2699_v61 = vld [vmem:[#allocation10 + $0x80] ss:$8 sps:$4 sm:$0xff]   ;;  %v2704_v62 = vld [vmem:[#allocation10 + $0x94] ss:$8 sps:$4 sm:$0xff]  }
 0x18f   :  { %1459 = vmatprep.subr.bf16.mxu0 %v2641_v63  ;;  %1545 = vmatprep.subr.bf16.mxu1 %v2644_v0  ;;  %v2702_v63 = vld [vmem:[#allocation10 + $0x90] ss:$8 sps:$4 sm:$0xff]   ;;  %v2707_v0 = vld [vmem:[#allocation10 + $0xa4] ss:$8 sps:$4 sm:$0xff]  }
 0x192   :  { %1460 = vmatpush1.bf16.msra.mxu0 %v2639_v1  ;;  %1546 = vmatpush1.bf16.msra.mxu1 %v2642_v2  ;;  %v2705_v1 = vld [vmem:[#allocation10 + $0xa0] ss:$8 sps:$4 sm:$0xff]   ;;  %v2710_v2 = vld [vmem:[#allocation10 + $0xb4] ss:$8 sps:$4 sm:$0xff]  }
 0x193   :  { %1461 = vmatprep.subr.bf16.mxu0 %v2647_v3  ;;  %1547 = vmatprep.subr.bf16.mxu1 %v2650_v4  ;;  %v2708_v3 = vld [vmem:[#allocation10 + $0xb0] ss:$8 sps:$4 sm:$0xff]   ;;  %v2713_v4 = vld [vmem:[#allocation10 + $0xc4] ss:$8 sps:$4 sm:$0xff]  }
 0x196   :  { %1462 = vmatpush1.bf16.msra.mxu0 %v2645_v9  ;;  %1548 = vmatpush1.bf16.msra.mxu1 %v2648_v10  ;;  %v2711_v9 = vld [vmem:[#allocation10 + $0xc0] ss:$8 sps:$4 sm:$0xff]   ;;  %v2716_v10 = vld [vmem:[#allocation10 + $0xd4] ss:$8 sps:$4 sm:$0xff]  }
 0x197   :  { %1463 = vmatprep.subr.bf16.mxu0 %v2653_v11  ;;  %1549 = vmatprep.subr.bf16.mxu1 %v2656_v12  ;;  %v2714_v11 = vld [vmem:[#allocation10 + $0xd0] ss:$8 sps:$4 sm:$0xff]   ;;  %v2719_v12 = vld [vmem:[#allocation10 + $0xe4] ss:$8 sps:$4 sm:$0xff]  }
 0x19a   :  { %1464 = vmatpush1.bf16.msra.mxu0 %v2651_v13  ;;  %1550 = vmatpush1.bf16.msra.mxu1 %v2654_v14  ;;  %v2717_v13 = vld [vmem:[#allocation10 + $0xe0] ss:$8 sps:$4 sm:$0xff]   ;;  %v2722_v14 = vld [vmem:[#allocation10 + $0xf4] ss:$8 sps:$4 sm:$0xff]  }
 0x19b   :  { %1465 = vmatprep.subr.bf16.mxu0 %v2659_v15  ;;  %1551 = vmatprep.subr.bf16.mxu1 %v2662_v16  ;;  %v2720_v15 = vld [vmem:[#allocation10 + $0xf0] ss:$8 sps:$4 sm:$0xff]   ;;  %v2725_v16 = vld [vmem:[#allocation10 + $0x104] ss:$8 sps:$4 sm:$0xff]  }
 0x19e   :  { %v577_v25 = vpop.f32.mrb[4].mxu1  ;;  %1466 = vmatpush1.bf16.msra.mxu0 %v2657_v19  ;;  %1552 = vmatpush1.bf16.msra.mxu1 %v2660_v20  ;;  %v734_v19 = vld [vmem:[%s3074_s4] sm:$0xf] }
 0x19f   :  { %v578_v28 = vadd.f32 %v577_v25, %v161_v21  ;;  %v579_v29 = vpop.f32.mrb[5].mxu1  ;;  %1467 = vmatprep.subr.bf16.mxu0 %v2665_v22  ;;  %1553 = vmatprep.subr.bf16.mxu1 %v2668_v23  ;;  %v739_v20 = vrot.slane %v734_v19, %v3016_v6  ;;  %v743_v22 = vrot.slane %v734_v19, %v3024_v8 }
 0x1a0   :  { %v580_v32 = vadd.f32 %v579_v29, %v165_v24  ;;  %v581_v33 = vpop.f32.mrb[6].mxu1  ;;  %v751_v23 = vrot.slane %v734_v19, %v164_v18 }
 0x1a1   :  { %v582_v34 = vadd.f32 %v581_v33, %v161_v21  ;;  %v583_v35 = vpop.f32.mrb[7].mxu1  ;;  %v588_v38 = vmax.f32 %v578_v28, 0.0  ;;  %v747_v21 = vrot.slane %v734_v19, %v160_v17  ;;  %v2770_v19 = vld [vmem:[#allocation10 + $0x1f4] ss:$8 sps:$4 sm:$0xff]  }
 0x1a2   :  { %v584_v36 = vadd.f32 %v583_v35, %v165_v24  ;;  %1468 = vmatpush1.bf16.msra.mxu0 %v2663_v26  ;;  %1554 = vmatpush1.bf16.msra.mxu1 %v2666_v27  ;;  %v589_v41 = vmax.f32 %v580_v32, 0.0 }
 0x1a3   :  { %v592_v39 = vmax.f32 %v582_v34, 0.0  ;;  %1469 = vmatprep.subr.bf16.mxu0 %v2671_v30  ;;  %1555 = vmatprep.subr.bf16.mxu1 %v2674_v31 }
 0x1a4   :  { %v593_v42 = vmax.f32 %v584_v36, 0.0 }
 0x1a5   :  { %v596_v43 = vpack.c.bf16 %v592_v39, %v588_v38 }
 0x1a6   :  { %v597_v44 = vpack.c.bf16 %v593_v42, %v589_v41  ;;  %1470 = vmatpush1.bf16.msra.mxu0 %v2669_v37  ;;  %1556 = vmatpush1.bf16.msra.mxu1 %v2672_v7 }
 0x1a7   :  { %1984 = vmatprep.subr.bf16.mxu0 %v2677_v40 }
 0x1a8   :  { %1471 = vmatprep.mubr.bf16.mxu0 %v597_v44  ;;  %1557 = vmatprep.mubr.bf16.mxu1 %v597_v44 }
 0x1a9   :  { %1472 = vmatmul.mubr.bf16.vlgmr.msra.gmra.mrb[0].mxu0 %v596_v43  ;;  %1558 = vmatmul.mubr.bf16.vlgmr.msra.gmra.mrb[8].mxu1 %v596_v43 }
 0x1aa   :  { %1985 = vmatpush1.bf16.msra.mxu0 %v2675_v45 }
 0x1ab   :  { %1986 = vmatprep.subr.bf16.mxu0 %v2680_v46 }
 0x1ae   :  { %1987 = vmatpush1.bf16.msra.mxu0 %v2678_v47 }
 0x1af   :  { %1988 = vmatprep.subr.bf16.mxu0 %v2683_v48  ;;  %v2723_v48 = vld [vmem:[#allocation10 + $0x100] ss:$8 sps:$4 sm:$0xff]  }
 0x1b2   :  { %1989 = vmatpush1.bf16.msra.mxu0 %v2681_v49  ;;  %v2728_v49 = vld [vmem:[#allocation10 + $0x114] ss:$8 sps:$4 sm:$0xff]  }
 0x1b3   :  { %1990 = vmatprep.subr.bf16.mxu0 %v2686_v50  ;;  %v2726_v50 = vld [vmem:[#allocation10 + $0x110] ss:$8 sps:$4 sm:$0xff]  }
 0x1b6   :  { %1991 = vmatpush1.bf16.msra.mxu0 %v2684_v51  ;;  %v2731_v51 = vld [vmem:[#allocation10 + $0x124] ss:$8 sps:$4 sm:$0xff]  }
 0x1b7   :  { %1992 = vmatprep.subr.bf16.mxu0 %v2689_v52  ;;  %v2729_v52 = vld [vmem:[#allocation10 + $0x120] ss:$8 sps:$4 sm:$0xff]  }
 0x1ba   :  { %1993 = vmatpush1.bf16.msra.mxu0 %v2687_v53  ;;  %v2734_v53 = vld [vmem:[#allocation10 + $0x134] ss:$8 sps:$4 sm:$0xff]  }
 0x1bb   :  { %1994 = vmatprep.subr.bf16.mxu0 %v2692_v54  ;;  %v2732_v54 = vld [vmem:[#allocation10 + $0x130] ss:$8 sps:$4 sm:$0xff]  }
 0x1be   :  { %1995 = vmatpush1.bf16.msra.mxu0 %v2690_v55  ;;  %v2737_v55 = vld [vmem:[#allocation10 + $0x144] ss:$8 sps:$4 sm:$0xff]  }
 0x1bf   :  { %1996 = vmatprep.subr.bf16.mxu0 %v2695_v56  ;;  %v2735_v56 = vld [vmem:[#allocation10 + $0x140] ss:$8 sps:$4 sm:$0xff]  }
 0x1c2   :  { %1997 = vmatpush1.bf16.msra.mxu0 %v2693_v57  ;;  %v2740_v57 = vld [vmem:[#allocation10 + $0x154] ss:$8 sps:$4 sm:$0xff]  }
 0x1c3   :  { %1998 = vmatprep.subr.bf16.mxu0 %v2698_v58  ;;  %v2738_v58 = vld [vmem:[#allocation10 + $0x150] ss:$8 sps:$4 sm:$0xff]  }
 0x1c6   :  { %1999 = vmatpush1.bf16.msra.mxu0 %v2696_v59  ;;  %v2743_v59 = vld [vmem:[#allocation10 + $0x164] ss:$8 sps:$4 sm:$0xff]  }
 0x1c7   :  { %2000 = vmatprep.subr.bf16.mxu0 %v2701_v60  ;;  %v2741_v60 = vld [vmem:[#allocation10 + $0x160] ss:$8 sps:$4 sm:$0xff]  }
 0x1ca   :  { %2001 = vmatpush1.bf16.msra.mxu0 %v2699_v61  ;;  %v2746_v61 = vld [vmem:[#allocation10 + $0x174] ss:$8 sps:$4 sm:$0xff]  }
 0x1cb   :  { %2002 = vmatprep.subr.bf16.mxu0 %v2704_v62  ;;  %v2744_v62 = vld [vmem:[#allocation10 + $0x170] ss:$8 sps:$4 sm:$0xff]  }
 0x1ce   :  { %2003 = vmatpush1.bf16.msra.mxu0 %v2702_v63  ;;  %v2749_v63 = vld [vmem:[#allocation10 + $0x184] ss:$8 sps:$4 sm:$0xff]  }
 0x1cf   :  { %2004 = vmatprep.subr.bf16.mxu0 %v2707_v0  ;;  %v2747_v0 = vld [vmem:[#allocation10 + $0x180] ss:$8 sps:$4 sm:$0xff]  }
 0x1d2   :  { %2005 = vmatpush1.bf16.msra.mxu0 %v2705_v1  ;;  %v2752_v1 = vld [vmem:[#allocation10 + $0x194] ss:$8 sps:$4 sm:$0xff]  }
 0x1d3   :  { %2006 = vmatprep.subr.bf16.mxu0 %v2710_v2  ;;  %v2750_v2 = vld [vmem:[#allocation10 + $0x190] ss:$8 sps:$4 sm:$0xff]  }
 0x1d6   :  { %2007 = vmatpush1.bf16.msra.mxu0 %v2708_v3  ;;  %v2755_v3 = vld [vmem:[#allocation10 + $0x1a4] ss:$8 sps:$4 sm:$0xff]  }
 0x1d7   :  { %2008 = vmatprep.subr.bf16.mxu0 %v2713_v4  ;;  %v2753_v4 = vld [vmem:[#allocation10 + $0x1a0] ss:$8 sps:$4 sm:$0xff]  }
 0x1da   :  { %2009 = vmatpush1.bf16.msra.mxu0 %v2711_v9  ;;  %v2758_v9 = vld [vmem:[#allocation10 + $0x1b4] ss:$8 sps:$4 sm:$0xff]  }
 0x1db   :  { %2010 = vmatprep.subr.bf16.mxu0 %v2716_v10  ;;  %v2756_v10 = vld [vmem:[#allocation10 + $0x1b0] ss:$8 sps:$4 sm:$0xff]  }
 0x1de   :  { %2011 = vmatpush1.bf16.msra.mxu0 %v2714_v11  ;;  %v2761_v11 = vld [vmem:[#allocation10 + $0x1c4] ss:$8 sps:$4 sm:$0xff]  }
 0x1df   :  { %2012 = vmatprep.subr.bf16.mxu0 %v2719_v12  ;;  %v2759_v12 = vld [vmem:[#allocation10 + $0x1c0] ss:$8 sps:$4 sm:$0xff]  }
 0x1e2   :  { %2013 = vmatpush1.bf16.msra.mxu0 %v2717_v13  ;;  %v2764_v13 = vld [vmem:[#allocation10 + $0x1d4] ss:$8 sps:$4 sm:$0xff]  }
 0x1e3   :  { %2014 = vmatprep.subr.bf16.mxu0 %v2722_v14  ;;  %v2762_v14 = vld [vmem:[#allocation10 + $0x1d0] ss:$8 sps:$4 sm:$0xff]  }
 0x1e6   :  { %2015 = vmatpush1.bf16.msra.mxu0 %v2720_v15  ;;  %v2767_v15 = vld [vmem:[#allocation10 + $0x1e4] ss:$8 sps:$4 sm:$0xff]  }
 0x1e7   :  { %2027 = vmatprep.subr.bf16.mxu0 %v2725_v16  ;;  %v2765_v16 = vld [vmem:[#allocation10 + $0x1e0] ss:$8 sps:$4 sm:$0xff]  }
 0x27c   :  { %v1473_v24 = vpop.f32.mrb[0].mxu0  ;;  %v1559_v25 = vpop.f32.mrb[8].mxu1 }
 0x27d   :  { %v2351_v26 = vadd.f32 %v1473_v24, %v739_v20  ;;  %v2355_v27 = vadd.f32 %v1559_v25, %v747_v21  ;;  %v1475_v28 = vpop.f32.mrb[1].mxu0  ;;  %v1561_v29 = vpop.f32.mrb[9].mxu1 }
 0x27e   :  { %v2352_v30 = vadd.f32 %v1475_v28, %v743_v22  ;;  %v2356_v31 = vadd.f32 %v1561_v29, %v751_v23  ;;  %v1477_v32 = vpop.f32.mrb[2].mxu0  ;;  %v1563_v33 = vpop.f32.mrb[10].mxu1 }
 0x27f   :  { %v2353_v34 = vadd.f32 %v1477_v32, %v739_v20  ;;  %v2357_v35 = vadd.f32 %v1563_v33, %v747_v21  ;;  %v1479_v36 = vpop.f32.mrb[3].mxu0  ;;  %v1565_v37 = vpop.f32.mrb[11].mxu1  ;;  %v1568_v38 = vmax.f32 %v2351_v26, 0.0  ;;  %v1570_v39 = vmax.f32 %v2355_v27, 0.0  ;;  %v2768_v20 = vld [vmem:[#allocation10 + $0x1f0] ss:$8 sps:$4 sm:$0xff]  }
 0x280   :  { %v2354_v17 = vadd.f32 %v1479_v36, %v743_v22  ;;  %v2358_v7 = vadd.f32 %v1565_v37, %v751_v23  ;;  %v1569_v40 = vmax.f32 %v2352_v30, 0.0  ;;  %v1571_v41 = vmax.f32 %v2356_v31, 0.0  ;;  %v1652_v21 = vld [vmem:[%s3076_s6] sm:$0x3]  ;;  %s2859_s6 = scalar_lea.vmem %s2080_s9, 512 }
 0x281   :  { %v1572_v5 = vmax.f32 %v2353_v34, 0.0  ;;  %v1574_v18 = vmax.f32 %v2357_v35, 0.0  ;;  %v1657_v22 = vrot.slane %v1652_v21, %v3016_v6  ;;  %v1661_v23 = vrot.slane %v1652_v21, %v3024_v8  ;;  %p2860_p4 = scmp.ne.s32.totalorder %s2080_s9, %s2859_s6  ;;  %p2865_p6 = scmp.lt.s32.totalorder %s2859_s6, %s2859_s6 }
 0x282   :  { %v1573_v42 = vmax.f32 %v2354_v17, 0.0  ;;  %v1575_v43 = vmax.f32 %v2358_v7, 0.0 }
 0x283   :  { %v1576_v44 = vpack.c.bf16 %v1572_v5, %v1568_v38  ;;  %v3047_v45 = vpack.c.bf16 %v1574_v18, %v1570_v39  ;;  %p2866_p7 = por %p2865_p6, %p2864_p5 }
 0x284   :  { %v1577_v46 = vpack.c.bf16 %v1573_v42, %v1569_v40  ;;  %v1579_v47 = vpack.c.bf16 %v1575_v43, %v1571_v41 }
 0x285   :  { %p2867_p8 = pnand %p2866_p7, %p2860_p4 }
 0x286   :  { %2016 = vmatprep.mubr.bf16.mxu0 %v1577_v46 }
 0x287   :  { %2017 = vmatmul.mubr.bf16.vlgmr.msra.gmra.mrb[4].mxu0 %v1576_v44 }
 0x288   :  { %2028 = vmatpush1.bf16.msra.mxu0 %v2723_v48  ;;  %2059 = vmatprep.mubr.bf16.mxu0 %v1579_v47 }
 0x289   :  { %2029 = vmatprep.subr.bf16.mxu0 %v2728_v49 }
 0x28c   :  { %2030 = vmatpush1.bf16.msra.mxu0 %v2726_v50 }
 0x28d   :  { %2031 = vmatprep.subr.bf16.mxu0 %v2731_v51 }
 0x290   :  { %2032 = vmatpush1.bf16.msra.mxu0 %v2729_v52 }
 0x291   :  { %2033 = vmatprep.subr.bf16.mxu0 %v2734_v53 }
 0x294   :  { %2034 = vmatpush1.bf16.msra.mxu0 %v2732_v54 }
 0x295   :  { %2035 = vmatprep.subr.bf16.mxu0 %v2737_v55 }
 0x298   :  { %2036 = vmatpush1.bf16.msra.mxu0 %v2735_v56 }
 0x299   :  { %2037 = vmatprep.subr.bf16.mxu0 %v2740_v57 }
 0x29c   :  { %2038 = vmatpush1.bf16.msra.mxu0 %v2738_v58 }
 0x29d   :  { %2039 = vmatprep.subr.bf16.mxu0 %v2743_v59 }
 0x2a0   :  { %2040 = vmatpush1.bf16.msra.mxu0 %v2741_v60 }
 0x2a1   :  { %2041 = vmatprep.subr.bf16.mxu0 %v2746_v61 }
 0x2a4   :  { %2042 = vmatpush1.bf16.msra.mxu0 %v2744_v62 }
 0x2a5   :  { %2043 = vmatprep.subr.bf16.mxu0 %v2749_v63 }
 0x2a8   :  { %2044 = vmatpush1.bf16.msra.mxu0 %v2747_v0 }
 0x2a9   :  { %2045 = vmatprep.subr.bf16.mxu0 %v2752_v1 }
 0x2ac   :  { %2046 = vmatpush1.bf16.msra.mxu0 %v2750_v2 }
 0x2ad   :  { %2047 = vmatprep.subr.bf16.mxu0 %v2755_v3 }
 0x2b0   :  { %2048 = vmatpush1.bf16.msra.mxu0 %v2753_v4 }
 0x2b1   :  { %2049 = vmatprep.subr.bf16.mxu0 %v2758_v9 }
 0x2b4   :  { %2050 = vmatpush1.bf16.msra.mxu0 %v2756_v10 }
 0x2b5   :  { %2051 = vmatprep.subr.bf16.mxu0 %v2761_v11 }
 0x2b8   :  { %2052 = vmatpush1.bf16.msra.mxu0 %v2759_v12 }
 0x2b9   :  { %2053 = vmatprep.subr.bf16.mxu0 %v2764_v13 }
 0x2bc   :  { %2054 = vmatpush1.bf16.msra.mxu0 %v2762_v14 }
 0x2bd   :  { %2055 = vmatprep.subr.bf16.mxu0 %v2767_v15 }
 0x2c0   :  { %2056 = vmatpush1.bf16.msra.mxu0 %v2765_v16 }
 0x2c1   :  { %2057 = vmatprep.subr.bf16.mxu0 %v2770_v19 }
 0x2c4   :  { %2058 = vmatpush1.bf16.msra.mxu0 %v2768_v20 }
 0x2c7   :  { %2060 = vmatmul.mubr.bf16.vlgmr.msra.gmra.mrb[4].mxu0 %v3047_v45 }
 0x39a   :  { %v2061_v24 = vpop.f32.mrb[4].mxu0 }
 0x39b   :  { %v2359_v25 = vadd.f32 %v2061_v24, %v1657_v22  ;;  %v2063_v26 = vpop.f32.mrb[5].mxu0 }
 0x39c   :  { %v2360_v27 = vadd.f32 %v2063_v26, %v1661_v23  ;;  %v2065_v28 = vpop.f32.mrb[6].mxu0 }
 0x39d   :  { %2070 = vst [vmem:[#allocation12] sm:$0xff] %v2359_v25  ;;  %v2361_v29 = vadd.f32 %v2065_v28, %v1657_v22  ;;  %v2067_v30 = vpop.f32.mrb[7].mxu0 }
 0x39e   :  { %2071 = vst [vmem:[#allocation12 + $0x8] sm:$0xff] %v2360_v27  ;;  %v2362_v31 = vadd.f32 %v2067_v30, %v1661_v23 }
 0x39f   :  { %2072 = vst [vmem:[#allocation12 + $0x10] sm:$0xff] %v2361_v29 }
 0x3a0   :  { %2073 = vst [vmem:[#allocation12 + $0x18] sm:$0xff] %v2362_v31 }
 0x3a1   :  { %2870 = shalt.err (!%p2867_p8)
}
 0x3a2   :  { %s2871_s14 = scalar_lea.hbm %s3077_s7, 512 }
 0x3a3   :  { %p2872_p9 = scmp.ne.s32.totalorder %s3077_s7, %s2871_s14  ;;  %p2875_p10 = scmp.lt.u32.totalorder %s2871_s14, %s3077_s7 }
 0x3a5   :  { %p2877_p11 = pnand %p2875_p10, %p2872_p9 }
 0x3a7   :  { %2880 = shalt.err (!%p2877_p11)
}
 0x3a8   :  { %2085 = dma.vmem_to_hbm [thread:$0]  %s2080_s9, 512, %s3077_s7, [#allocation6], %s2890_s11, %s2890_s11, %s2891_s12  }
 0x3a9   :  { %2887 = dma.done.wait [#allocation6], 512  }
 0x3aa   :  { %2888 = vsyncadd [#allocation6], 4294966784 }
 0x3ab   :  { %2089 = vsyncpa [#allocation5], 1 }
 0x3ac   :  { %2090 = vsyncpa [#allocation8], 1 }
 0x3ad   :  { %2091 = vsyncpa [#allocation11], 1 }
 0x3ae   :  { %2092 = vsyncpa [#allocation6], 1 }

// kernel: tpu_custom_call.1
= control target key start
LH: loop header
LB: loop body
LE: loop exit
PB: predicated region body
PF: predicated region fallthrough
CT: control target
= control target key end

     0   :  { %12 = vsyncpa [#allocation5], 0  ;;  %s3070_s0 = inlined_call_operand.hbm [shape: bf16[16,256], index: 0, kind: input, shape index: {}]   ;;  %s3071_s1 = inlined_call_operand.hbm [shape: bf16[256,512], index: 1, kind: input, shape index: {}]   ;;  %s3072_s2 = inlined_call_operand.vmem [shape: f32[1,512], index: 2, kind: input, shape index: {}]   ;;  %s3073_s3 = inlined_call_operand.hbm [shape: bf16[512,512], index: 3, kind: input, shape index: {}]   ;;  %s3074_s4 = inlined_call_operand.vmem [shape: f32[1,512], index: 4, kind: input, shape index: {}]   ;;  %s3075_s5 = inlined_call_operand.hbm [shape: bf16[512,256], index: 5, kind: input, shape index: {}]   ;;  %s3076_s6 = inlined_call_operand.vmem [shape: f32[1,256], index: 6, kind: input, shape index: {}]   ;;  %s3077_s7 = inlined_call_operand.hbm [shape: f32[16,256], index: 7, kind: output, shape index: {}]  }
   0x1   :  { %13 = vsyncpa [#allocation8], 0 }
   0x2   :  { %14 = vsyncpa [#allocation11], 0 }
   0x3   :  { %15 = vsyncpa [#allocation6], 0  ;;  %s2889_s24 = smov [#allocation7]   ;;  %s2771_s28 = scalar_lea.hbm %s3071_s1, 8192 }
   0x4   :  { %s33_s25 = sshll.u32 %s2889_s24, 4  ;;  %p2772_p0 = scmp.ne.s32.totalorder %s3071_s1, %s2771_s28  ;;  %s34_s25 = int_to_ptr.vmem [resolvable:$true] %s33_s25 }
   0x5   :  { %p2775_p1 = scmp.lt.u32.totalorder %s2771_s28, %s3071_s1 }
   0x7   :  { %p2777_p2 = pnand %p2775_p1, %p2772_p0 }
   0x9   :  { %2780 = shalt.err (!%p2777_p2)
}
   0xa   :  { %s2781_s10 = scalar_lea.vmem %s34_s25, 8192  ;;  %p2786_p4 = scmp.lt.s32.totalorder %s34_s25, %s34_s25 }
   0xb   :  { %p2782_p3 = scmp.ne.s32.totalorder %s34_s25, %s2781_s10  ;;  %p2787_p5 = scmp.lt.s32.totalorder %s2781_s10, %s2781_s10 }
   0xd   :  { %p2788_p6 = por %p2787_p5, %p2786_p4 }
   0xf   :  { %p2789_p7 = pnand %p2788_p6, %p2782_p3 }
  0x11   :  { %2792 = shalt.err (!%p2789_p7)
}
  0x12   :  { %s2890_s11 = smov 256   ;;  %s2891_s12 = smov 16  }
  0x13   :  { %39 = dma.hbm_to_vmem [thread:$0]  %s3071_s1, 8192, %s34_s25, [#allocation8], %s2890_s11, %s2890_s11, %s2891_s12  }
  0x14   :  { %s2892_s15 = smov [#allocation4]   ;;  %s2793_s19 = scalar_lea.hbm %s3070_s0, 256 }
  0x15   :  { %s21_s16 = sshll.u32 %s2892_s15, 4  ;;  %p2794_p8 = scmp.ne.s32.totalorder %s3070_s0, %s2793_s19  ;;  %s22_s16 = int_to_ptr.vmem [resolvable:$true] %s21_s16 }
  0x16   :  { %p2797_p9 = scmp.lt.u32.totalorder %s2793_s19, %s3070_s0 }
  0x18   :  { %p2799_p10 = pnand %p2797_p9, %p2794_p8 }
  0x1a   :  { %2802 = shalt.err (!%p2799_p10)
}
  0x1b   :  { %s2803_s24 = scalar_lea.vmem %s22_s16, 256  ;;  %p2808_p12 = scmp.lt.s32.totalorder %s22_s16, %s22_s16 }
  0x1c   :  { %p2804_p11 = scmp.ne.s32.totalorder %s22_s16, %s2803_s24  ;;  %p2809_p13 = scmp.lt.s32.totalorder %s2803_s24, %s2803_s24 }
  0x1e   :  { %p2810_p0 = por %p2809_p13, %p2808_p12 }
  0x20   :  { %p2811_p1 = pnand %p2810_p0, %p2804_p11 }
  0x22   :  { %2814 = shalt.err (!%p2811_p1)
}
  0x23   :  { %s2893_s1 = smov 128   ;;  %s2894_s25 = smov 8  }
  0x24   :  { %27 = dma.hbm_to_vmem [thread:$0]  %s3070_s0, 256, %s22_s16, [#allocation5], %s2893_s1, %s2893_s1, %s2894_s25  }
  0x25   :  { %s2895_s28 = smov [#allocation9]   ;;  %s2896_s30 = smov [#allocation10]  }
  0x26   :  { %s47_s29 = sshll.u32 %s2895_s28, 4  ;;  %s61_s8 = sshll.u32 %s2896_s30, 4  ;;  %s48_s29 = int_to_ptr.vmem [resolvable:$true] %s47_s29  ;;  %s2968_s8 = int_to_ptr.vmem [resolvable:$true] %s61_s8 }
  0x27   :  { %s2815_s13 = scalar_lea.hbm %s3073_s3, 16384 }
  0x28   :  { %p2816_p2 = scmp.ne.s32.totalorder %s3073_s3, %s2815_s13  ;;  %p2819_p3 = scmp.lt.u32.totalorder %s2815_s13, %s3073_s3 }
  0x2a   :  { %p2821_p4 = pnand %p2819_p3, %p2816_p2 }
  0x2c   :  { %2824 = shalt.err (!%p2821_p4)
}
  0x2d   :  { %s2825_s0 = scalar_lea.vmem %s48_s29, 16384  ;;  %p2830_p6 = scmp.lt.s32.totalorder %s48_s29, %s48_s29 }
  0x2e   :  { %p2826_p5 = scmp.ne.s32.totalorder %s48_s29, %s2825_s0  ;;  %p2831_p7 = scmp.lt.s32.totalorder %s2825_s0, %s2825_s0 }
  0x30   :  { %p2832_p8 = por %p2831_p7, %p2830_p6 }
  0x32   :  { %p2833_p9 = pnand %p2832_p8, %p2826_p5 }
  0x34   :  { %2836 = shalt.err (!%p2833_p9)
}
  0x35   :  { %53 = dma.hbm_to_vmem [thread:$0]  %s3073_s3, 16384, %s48_s29, [#allocation8], %s2890_s11, %s2890_s11, %s2891_s12  }
  0x36   :  { %s2837_s22 = scalar_lea.hbm %s3075_s5, 8192 }
  0x37   :  { %p2838_p10 = scmp.ne.s32.totalorder %s3075_s5, %s2837_s22  ;;  %p2841_p11 = scmp.lt.u32.totalorder %s2837_s22, %s3075_s5 }
  0x39   :  { %p2843_p12 = pnand %p2841_p11, %p2838_p10 }
  0x3b   :  { %2846 = shalt.err (!%p2843_p12)
}
  0x3c   :  { %s2847_s28 = scalar_lea.vmem %s2968_s8, 8192  ;;  %p2852_p0 = scmp.lt.s32.totalorder %s2968_s8, %s2968_s8 }
  0x3d   :  { %p2848_p13 = scmp.ne.s32.totalorder %s2968_s8, %s2847_s28  ;;  %p2853_p1 = scmp.lt.s32.totalorder %s2847_s28, %s2847_s28 }
  0x3f   :  { %p2854_p2 = por %p2853_p1, %p2852_p0 }
  0x41   :  { %p2855_p3 = pnand %p2854_p2, %p2848_p13 }
  0x43   :  { %2858 = shalt.err (!%p2855_p3)
}
  0x44   :  { %67 = dma.hbm_to_vmem [thread:$0]  %s3075_s5, 8192, %s2968_s8, [#allocation11], %s2893_s1, %s2893_s1, %s2894_s25  }
  0x45   :  { %2881 = dma.done.wait [#allocation5], 256  }
  0x46   :  { %2882 = vsyncadd [#allocation5], 4294967040 }
  0x47   :  { %2883 = dma.done.wait [#allocation8], 24576  }
  0x48   :  { %2884 = vsyncadd [#allocation8], 4294942720 }
  0x49   :  { %2885 = dma.done.wait [#allocation11], 8192  }
  0x4a   :  { %2886 = vsyncadd [#allocation11], 4294959104  ;;  %v2384_v0 = vld [vmem:[#allocation7 + $0x4] ss:$16 sps:$4 sm:$0xff]   ;;  %v2386_v1 = vld [vmem:[#allocation7] ss:$16 sps:$4 sm:$0xff]  }
  0x4b   :  { %500 = vmatprep.subr.bf16.mxu1 %v2384_v0  ;;  %v2387_v2 = vld [vmem:[#allocation7 + $0x24] ss:$16 sps:$4 sm:$0xff]   ;;  %v2389_v3 = vld [vmem:[#allocation7 + $0x20] ss:$16 sps:$4 sm:$0xff]   ;;  %v2437_v42 = vld [vmem:[#allocation7 + $0xc] ss:$16 sps:$4 sm:$0xff]  }
  0x4c   :  { %501 = vmatpush1.bf16.msra.mxu1 %v2386_v1  ;;  %v2390_v4 = vld [vmem:[#allocation7 + $0x44] ss:$16 sps:$4 sm:$0xff]   ;;  %v2392_v5 = vld [vmem:[#allocation7 + $0x40] ss:$16 sps:$4 sm:$0xff]   ;;  %v2435_v46 = vld [vmem:[#allocation7 + $0x8] ss:$16 sps:$4 sm:$0xff]  }
  0x4d   :  { %502 = vmatprep.subr.bf16.mxu1 %v2387_v2  ;;  %v2393_v6 = vld [vmem:[#allocation7 + $0x64] ss:$16 sps:$4 sm:$0xff]   ;;  %v2395_v7 = vld [vmem:[#allocation7 + $0x60] ss:$16 sps:$4 sm:$0xff]   ;;  %v2440_v47 = vld [vmem:[#allocation7 + $0x2c] ss:$16 sps:$4 sm:$0xff]  }
  0x4e   :  { %v2396_v8 = vld [vmem:[#allocation7 + $0x84] ss:$16 sps:$4 sm:$0xff]   ;;  %v2398_v9 = vld [vmem:[#allocation7 + $0x80] ss:$16 sps:$4 sm:$0xff]   ;;  %v2438_v50 = vld [vmem:[#allocation7 + $0x28] ss:$16 sps:$4 sm:$0xff]  }
  0x4f   :  { %v2399_v10 = vld [vmem:[#allocation7 + $0xa4] ss:$16 sps:$4 sm:$0xff]   ;;  %v2401_v11 = vld [vmem:[#allocation7 + $0xa0] ss:$16 sps:$4 sm:$0xff]   ;;  %v2443_v51 = vld [vmem:[#allocation7 + $0x4c] ss:$16 sps:$4 sm:$0xff]  }
  0x50   :  { %503 = vmatpush1.bf16.msra.mxu1 %v2389_v3  ;;  %v2402_v12 = vld [vmem:[#allocation7 + $0xc4] ss:$16 sps:$4 sm:$0xff]   ;;  %v2404_v14 = vld [vmem:[#allocation7 + $0xc0] ss:$16 sps:$4 sm:$0xff]   ;;  %v2441_v54 = vld [vmem:[#allocation7 + $0x48] ss:$16 sps:$4 sm:$0xff]  }
  0x51   :  { %504 = vmatprep.subr.bf16.mxu1 %v2390_v4  ;;  %v3005_v13 = vld [vmem:[#allocation4 + $0x4] ss:$8 sps:$4 sm:$0xff]   ;;  %v2407_v16 = vld [vmem:[#allocation7 + $0xe0] ss:$16 sps:$4 sm:$0xff]   ;;  %v2444_v58 = vld [vmem:[#allocation7 + $0x68] ss:$16 sps:$4 sm:$0xff]  }
  0x52   :  { %v2405_v15 = vld [vmem:[#allocation7 + $0xe4] ss:$16 sps:$4 sm:$0xff]   ;;  %532 = vmatprep.mubr.bf16.mxu1 %v3005_v13  ;;  %v2410_v18 = vld [vmem:[#allocation7 + $0x100] ss:$16 sps:$4 sm:$0xff]   ;;  %v2446_v55 = vld [vmem:[#allocation7 + $0x6c] ss:$16 sps:$4 sm:$0xff]  }
  0x53   :  { %v2408_v17 = vld [vmem:[#allocation7 + $0x104] ss:$16 sps:$4 sm:$0xff]   ;;  %v2413_v20 = vld [vmem:[#allocation7 + $0x120] ss:$16 sps:$4 sm:$0xff]   ;;  %v2449_v59 = vld [vmem:[#allocation7 + $0x8c] ss:$16 sps:$4 sm:$0xff]  }
  0x54   :  { %505 = vmatpush1.bf16.msra.mxu1 %v2392_v5  ;;  %v2411_v19 = vld [vmem:[#allocation7 + $0x124] ss:$16 sps:$4 sm:$0xff]   ;;  %v2416_v22 = vld [vmem:[#allocation7 + $0x140] ss:$16 sps:$4 sm:$0xff]   ;;  %v2447_v62 = vld [vmem:[#allocation7 + $0x88] ss:$16 sps:$4 sm:$0xff]  }
  0x55   :  { %506 = vmatprep.subr.bf16.mxu1 %v2393_v6  ;;  %v2414_v21 = vld [vmem:[#allocation7 + $0x144] ss:$16 sps:$4 sm:$0xff]   ;;  %v2419_v24 = vld [vmem:[#allocation7 + $0x160] ss:$16 sps:$4 sm:$0xff]   ;;  %v2452_v63 = vld [vmem:[#allocation7 + $0xac] ss:$16 sps:$4 sm:$0xff]  }
  0x56   :  { %v2417_v23 = vld [vmem:[#allocation7 + $0x164] ss:$16 sps:$4 sm:$0xff]   ;;  %v2422_v27 = vld [vmem:[#allocation7 + $0x180] ss:$16 sps:$4 sm:$0xff]   ;;  %v2450_v1 = vld [vmem:[#allocation7 + $0xa8] ss:$16 sps:$4 sm:$0xff]  }
  0x57   :  { %v2420_v25 = vld [vmem:[#allocation7 + $0x184] ss:$16 sps:$4 sm:$0xff]   ;;  %v2488_v28 = vld [vmem:[#allocation9] ss:$16 sps:$4 sm:$0xff]   ;;  %v2455_v3 = vld [vmem:[#allocation7 + $0xcc] ss:$16 sps:$4 sm:$0xff]  }
  0x58   :  { %507 = vmatpush1.bf16.msra.mxu1 %v2395_v7  ;;  %v2483_v26 = vld [vmem:[#allocation9 + $0x4] ss:$16 sps:$4 sm:$0xff]   ;;  %v2494_v31 = vld [vmem:[#allocation9 + $0x20] ss:$16 sps:$4 sm:$0xff]   ;;  %v2453_v6 = vld [vmem:[#allocation7 + $0xc8] ss:$16 sps:$4 sm:$0xff]  }
  0x59   :  { %508 = vmatprep.subr.bf16.mxu1 %v2396_v8  ;;  %1396 = vmatprep.subr.bf16.mxu0 %v2483_v26  ;;  %v2489_v29 = vld [vmem:[#allocation9 + $0x24] ss:$16 sps:$4 sm:$0xff]   ;;  %v2425_v33 = vld [vmem:[#allocation7 + $0x1a0] ss:$16 sps:$4 sm:$0xff]   ;;  %v2458_v7 = vld [vmem:[#allocation7 + $0xec] ss:$16 sps:$4 sm:$0xff]  }
  0x5a   :  { %v2423_v30 = vld [vmem:[#allocation7 + $0x1a4] ss:$16 sps:$4 sm:$0xff]   ;;  %1397 = vmatpush1.bf16.msra.mxu0 %v2488_v28  ;;  %v2500_v35 = vld [vmem:[#allocation9 + $0x40] ss:$16 sps:$4 sm:$0xff]   ;;  %v2477_v26 = vld [vmem:[#allocation7 + $0x1c8] ss:$16 sps:$4 sm:$0xff]  }
  0x5b   :  { %1398 = vmatprep.subr.bf16.mxu0 %v2489_v29  ;;  %v2495_v32 = vld [vmem:[#allocation9 + $0x44] ss:$16 sps:$4 sm:$0xff]   ;;  %v2428_v37 = vld [vmem:[#allocation7 + $0x1c0] ss:$16 sps:$4 sm:$0xff]   ;;  %v2480_v28 = vld [vmem:[#allocation7 + $0x1e8] ss:$16 sps:$4 sm:$0xff]  }
  0x5c   :  { %509 = vmatpush1.bf16.msra.mxu1 %v2398_v9  ;;  %v2426_v34 = vld [vmem:[#allocation7 + $0x1c4] ss:$16 sps:$4 sm:$0xff]   ;;  %v2506_v39 = vld [vmem:[#allocation9 + $0x60] ss:$16 sps:$4 sm:$0xff]   ;;  %v2487_v29 = vld [vmem:[#allocation9 + $0xc] ss:$16 sps:$4 sm:$0xff]  }
  0x5d   :  { %510 = vmatprep.subr.bf16.mxu1 %v2399_v10  ;;  %v2501_v36 = vld [vmem:[#allocation9 + $0x64] ss:$16 sps:$4 sm:$0xff]   ;;  %v2431_v41 = vld [vmem:[#allocation7 + $0x1e0] ss:$16 sps:$4 sm:$0xff]   ;;  %v2456_v10 = vld [vmem:[#allocation7 + $0xe8] ss:$16 sps:$4 sm:$0xff]  }
  0x5e   :  { %1399 = vmatpush1.bf16.msra.mxu0 %v2494_v31  ;;  %v2429_v38 = vld [vmem:[#allocation7 + $0x1e4] ss:$16 sps:$4 sm:$0xff]   ;;  %v2512_v43 = vld [vmem:[#allocation9 + $0x80] ss:$16 sps:$4 sm:$0xff]   ;;  %v2493_v31 = vld [vmem:[#allocation9 + $0x2c] ss:$16 sps:$4 sm:$0xff]  }
  0x5f   :  { %1400 = vmatprep.subr.bf16.mxu0 %v2495_v32  ;;  %v2507_v40 = vld [vmem:[#allocation9 + $0x84] ss:$16 sps:$4 sm:$0xff]   ;;  %v3008_v45 = vld [vmem:[#allocation4] ss:$8 sps:$4 sm:$0xff]   ;;  %s2897_s8 = smov [#allocation12]  }
  0x60   :  { %511 = vmatpush1.bf16.msra.mxu1 %v2401_v11  ;;  %v2513_v44 = vld [vmem:[#allocation9 + $0xa4] ss:$16 sps:$4 sm:$0xff]   ;;  %v2518_v48 = vld [vmem:[#allocation9 + $0xa0] ss:$16 sps:$4 sm:$0xff]   ;;  %v2461_v11 = vld [vmem:[#allocation7 + $0x10c] ss:$16 sps:$4 sm:$0xff]  }
  0x61   :  { %512 = vmatprep.subr.bf16.mxu1 %v2402_v12  ;;  %v2519_v49 = vld [vmem:[#allocation9 + $0xc4] ss:$16 sps:$4 sm:$0xff]   ;;  %v2524_v52 = vld [vmem:[#allocation9 + $0xc0] ss:$16 sps:$4 sm:$0xff]   ;;  %v2491_v32 = vld [vmem:[#allocation9 + $0x28] ss:$16 sps:$4 sm:$0xff]  }
  0x62   :  { %1401 = vmatpush1.bf16.msra.mxu0 %v2500_v35  ;;  %v2525_v53 = vld [vmem:[#allocation9 + $0xe4] ss:$16 sps:$4 sm:$0xff]   ;;  %v2530_v56 = vld [vmem:[#allocation9 + $0xe0] ss:$16 sps:$4 sm:$0xff]   ;;  %v2505_v35 = vld [vmem:[#allocation9 + $0x6c] ss:$16 sps:$4 sm:$0xff]  }
  0x63   :  { %1402 = vmatprep.subr.bf16.mxu0 %v2501_v36  ;;  %v2531_v57 = vld [vmem:[#allocation9 + $0x104] ss:$16 sps:$4 sm:$0xff]   ;;  %v2536_v60 = vld [vmem:[#allocation9 + $0x100] ss:$16 sps:$4 sm:$0xff]   ;;  %v2503_v36 = vld [vmem:[#allocation9 + $0x68] ss:$16 sps:$4 sm:$0xff]  }
  0x64   :  { %513 = vmatpush1.bf16.msra.mxu1 %v2404_v14  ;;  %v2537_v61 = vld [vmem:[#allocation9 + $0x124] ss:$16 sps:$4 sm:$0xff]   ;;  %v2542_v0 = vld [vmem:[#allocation9 + $0x120] ss:$16 sps:$4 sm:$0xff]   ;;  %v2459_v14 = vld [vmem:[#allocation7 + $0x108] ss:$16 sps:$4 sm:$0xff]  }
  0x65   :  { %514 = vmatprep.subr.bf16.mxu1 %v2405_v15  ;;  %v2543_v2 = vld [vmem:[#allocation9 + $0x144] ss:$16 sps:$4 sm:$0xff]   ;;  %v2548_v4 = vld [vmem:[#allocation9 + $0x140] ss:$16 sps:$4 sm:$0xff]   ;;  %v2464_v15 = vld [vmem:[#allocation7 + $0x12c] ss:$16 sps:$4 sm:$0xff]  }
  0x66   :  { %1403 = vmatpush1.bf16.msra.mxu0 %v2506_v39  ;;  %v2549_v5 = vld [vmem:[#allocation9 + $0x164] ss:$16 sps:$4 sm:$0xff]   ;;  %v2554_v8 = vld [vmem:[#allocation9 + $0x160] ss:$16 sps:$4 sm:$0xff]   ;;  %v2517_v39 = vld [vmem:[#allocation9 + $0xac] ss:$16 sps:$4 sm:$0xff]  }
  0x67   :  { %1404 = vmatprep.subr.bf16.mxu0 %v2507_v40  ;;  %v2555_v9 = vld [vmem:[#allocation9 + $0x184] ss:$16 sps:$4 sm:$0xff]   ;;  %v2560_v12 = vld [vmem:[#allocation9 + $0x180] ss:$16 sps:$4 sm:$0xff]   ;;  %v2515_v40 = vld [vmem:[#allocation9 + $0xa8] ss:$16 sps:$4 sm:$0xff]  }
  0x68   :  { %515 = vmatpush1.bf16.msra.mxu1 %v2407_v16  ;;  %v2462_v16 = vld [vmem:[#allocation7 + $0x128] ss:$16 sps:$4 sm:$0xff]   ;;  %s2079_s9 = sshll.u32 %s2897_s8, 4  ;;  %s2080_s9 = int_to_ptr.vmem [resolvable:$true] %s2079_s9 }
  0x69   :  { %516 = vmatprep.subr.bf16.mxu1 %v2408_v17  ;;  %v2467_v17 = vld [vmem:[#allocation7 + $0x14c] ss:$16 sps:$4 sm:$0xff]   ;;  %p2864_p5 = scmp.lt.s32.totalorder %s2080_s9, %s2080_s9 }
  0x6a   :  { %1405 = vmatpush1.bf16.msra.mxu0 %v2512_v43  ;;  %v2567_v43 = vld [vmem:[#allocation9 + $0x1c4] ss:$16 sps:$4 sm:$0xff]  }
  0x6b   :  { %1406 = vmatprep.subr.bf16.mxu0 %v2513_v44  ;;  %v2521_v44 = vld [vmem:[#allocation9 + $0xc8] ss:$16 sps:$4 sm:$0xff]  }
  0x6c   :  { %517 = vmatpush1.bf16.msra.mxu1 %v2410_v18  ;;  %v2465_v18 = vld [vmem:[#allocation7 + $0x148] ss:$16 sps:$4 sm:$0xff]  }
  0x6d   :  { %518 = vmatprep.subr.bf16.mxu1 %v2411_v19  ;;  %v2470_v19 = vld [vmem:[#allocation7 + $0x16c] ss:$16 sps:$4 sm:$0xff]  }
  0x6e   :  { %1407 = vmatpush1.bf16.msra.mxu0 %v2518_v48  ;;  %v2527_v48 = vld [vmem:[#allocation9 + $0xe8] ss:$16 sps:$4 sm:$0xff]  }
  0x6f   :  { %1408 = vmatprep.subr.bf16.mxu0 %v2519_v49  ;;  %v2578_v49 = vld [vmem:[#allocation9 + $0x1e0] ss:$16 sps:$4 sm:$0xff]  }
  0x70   :  { %519 = vmatpush1.bf16.msra.mxu1 %v2413_v20  ;;  %v2468_v20 = vld [vmem:[#allocation7 + $0x168] ss:$16 sps:$4 sm:$0xff]  }
  0x71   :  { %520 = vmatprep.subr.bf16.mxu1 %v2414_v21  ;;  %v2473_v21 = vld [vmem:[#allocation7 + $0x18c] ss:$16 sps:$4 sm:$0xff]  }
  0x72   :  { %1409 = vmatpush1.bf16.msra.mxu0 %v2524_v52  ;;  %v2533_v52 = vld [vmem:[#allocation9 + $0x108] ss:$16 sps:$4 sm:$0xff]  }
  0x73   :  { %1410 = vmatprep.subr.bf16.mxu0 %v2525_v53  ;;  %v2541_v53 = vld [vmem:[#allocation9 + $0x12c] ss:$16 sps:$4 sm:$0xff]  }
  0x74   :  { %521 = vmatpush1.bf16.msra.mxu1 %v2416_v22  ;;  %v2471_v22 = vld [vmem:[#allocation7 + $0x188] ss:$16 sps:$4 sm:$0xff]  }
  0x75   :  { %522 = vmatprep.subr.bf16.mxu1 %v2417_v23  ;;  %v2476_v23 = vld [vmem:[#allocation7 + $0x1ac] ss:$16 sps:$4 sm:$0xff]  }
  0x76   :  { %1411 = vmatpush1.bf16.msra.mxu0 %v2530_v56  ;;  %v2545_v56 = vld [vmem:[#allocation9 + $0x148] ss:$16 sps:$4 sm:$0xff]  }
  0x77   :  { %1412 = vmatprep.subr.bf16.mxu0 %v2531_v57  ;;  %v2553_v57 = vld [vmem:[#allocation9 + $0x16c] ss:$16 sps:$4 sm:$0xff]  }
  0x78   :  { %523 = vmatpush1.bf16.msra.mxu1 %v2419_v24  ;;  %v2474_v24 = vld [vmem:[#allocation7 + $0x1a8] ss:$16 sps:$4 sm:$0xff]  }
  0x79   :  { %524 = vmatprep.subr.bf16.mxu1 %v2420_v25  ;;  %v2479_v25 = vld [vmem:[#allocation7 + $0x1cc] ss:$16 sps:$4 sm:$0xff]  }
  0x7a   :  { %1413 = vmatpush1.bf16.msra.mxu0 %v2536_v60  ;;  %v2557_v60 = vld [vmem:[#allocation9 + $0x188] ss:$16 sps:$4 sm:$0xff]  }
  0x7b   :  { %1414 = vmatprep.subr.bf16.mxu0 %v2537_v61  ;;  %v2565_v61 = vld [vmem:[#allocation9 + $0x1ac] ss:$16 sps:$4 sm:$0xff]  }
  0x7c   :  { %525 = vmatpush1.bf16.msra.mxu1 %v2422_v27  ;;  %v2482_v27 = vld [vmem:[#allocation7 + $0x1ec] ss:$16 sps:$4 sm:$0xff]  }
  0x7d   :  { %526 = vmatprep.subr.bf16.mxu1 %v2423_v30  ;;  %v2485_v30 = vld [vmem:[#allocation9 + $0x8] ss:$16 sps:$4 sm:$0xff]  }
  0x7e   :  { %1415 = vmatpush1.bf16.msra.mxu0 %v2542_v0  ;;  %v2569_v0 = vld [vmem:[#allocation9 + $0x1c8] ss:$16 sps:$4 sm:$0xff]  }
  0x7f   :  { %1416 = vmatprep.subr.bf16.mxu0 %v2543_v2  ;;  %v2575_v2 = vld [vmem:[#allocation9 + $0x1e8] ss:$16 sps:$4 sm:$0xff]  }
  0x80   :  { %527 = vmatpush1.bf16.msra.mxu1 %v2425_v33  ;;  %v2499_v33 = vld [vmem:[#allocation9 + $0x4c] ss:$16 sps:$4 sm:$0xff]  }
  0x81   :  { %528 = vmatprep.subr.bf16.mxu1 %v2426_v34  ;;  %v2497_v34 = vld [vmem:[#allocation9 + $0x48] ss:$16 sps:$4 sm:$0xff]  }
  0x82   :  { %1417 = vmatpush1.bf16.msra.mxu0 %v2548_v4  ;;  %v150_v4 = vlaneseq }
  0x83   :  { %1418 = vmatprep.subr.bf16.mxu0 %v2549_v5 }
  0x84   :  { %529 = vmatpush1.bf16.msra.mxu1 %v2428_v37  ;;  %v2511_v37 = vld [vmem:[#allocation9 + $0x8c] ss:$16 sps:$4 sm:$0xff]   ;;  %v3013_v5 = vshrl.u32 %v150_v4, 7 }
  0x85   :  { %530 = vmatprep.subr.bf16.mxu1 %v2429_v38  ;;  %v2509_v38 = vld [vmem:[#allocation9 + $0x88] ss:$16 sps:$4 sm:$0xff]   ;;  %v2650_v4 = vld [vmem:[#allocation9 + $0x36c] ss:$16 sps:$4 sm:$0xff]  }
  0x86   :  { %1419 = vmatpush1.bf16.msra.mxu0 %v2554_v8  ;;  %v3024_v8 = vsub.s32 1, %v3013_v5 }
  0x87   :  { %1420 = vmatprep.subr.bf16.mxu0 %v2555_v9 }
  0x88   :  { %531 = vmatpush1.bf16.msra.mxu1 %v2431_v41  ;;  %v2566_v41 = vld [vmem:[#allocation9 + $0x1a0] ss:$16 sps:$4 sm:$0xff]  }
  0x89   :  { %543 = vmatprep.subr.bf16.mxu1 %v2437_v42  ;;  %v2523_v42 = vld [vmem:[#allocation9 + $0xcc] ss:$16 sps:$4 sm:$0xff]  }
  0x8a   :  { %1421 = vmatpush1.bf16.msra.mxu0 %v2560_v12 }
  0x8b   :  { %533 = vmatmul.mubr.bf16.vlgmr.msra.gmra.mrb[0].mxu1 %v3008_v45 }
  0x8c   :  { %544 = vmatpush1.bf16.msra.mxu1 %v2435_v46  ;;  %575 = vmatprep.mubr.bf16.mxu1 %v3005_v13  ;;  %v2561_v13 = vld [vmem:[#allocation9 + $0x1a4] ss:$16 sps:$4 sm:$0xff]   ;;  %v2529_v46 = vld [vmem:[#allocation9 + $0xec] ss:$16 sps:$4 sm:$0xff]  }
  0x8d   :  { %545 = vmatprep.subr.bf16.mxu1 %v2440_v47  ;;  %1422 = vmatprep.subr.bf16.mxu0 %v2561_v13  ;;  %v2573_v47 = vld [vmem:[#allocation9 + $0x1e4] ss:$16 sps:$4 sm:$0xff]  }
  0x8e   :  { %1423 = vmatpush1.bf16.msra.mxu0 %v2566_v41  ;;  %v2603_v41 = vld [vmem:[#allocation9 + $0x280] ss:$16 sps:$4 sm:$0xff]  }
  0x8f   :  { %1424 = vmatprep.subr.bf16.mxu0 %v2567_v43  ;;  %v2611_v43 = vld [vmem:[#allocation9 + $0x2a4] ss:$16 sps:$4 sm:$0xff]  }
  0x90   :  { %546 = vmatpush1.bf16.msra.mxu1 %v2438_v50  ;;  %v2535_v50 = vld [vmem:[#allocation9 + $0x10c] ss:$16 sps:$4 sm:$0xff]  }
  0x91   :  { %547 = vmatprep.subr.bf16.mxu1 %v2443_v51  ;;  %v2581_v51 = vld [vmem:[#allocation9 + $0x204] ss:$16 sps:$4 sm:$0xff]  }
  0x94   :  { %548 = vmatpush1.bf16.msra.mxu1 %v2441_v54  ;;  %v2539_v54 = vld [vmem:[#allocation9 + $0x128] ss:$16 sps:$4 sm:$0xff]  }
  0x95   :  { %549 = vmatprep.subr.bf16.mxu1 %v2446_v55  ;;  %v2547_v55 = vld [vmem:[#allocation9 + $0x14c] ss:$16 sps:$4 sm:$0xff]  }
  0x98   :  { %550 = vmatpush1.bf16.msra.mxu1 %v2444_v58  ;;  %v2551_v58 = vld [vmem:[#allocation9 + $0x168] ss:$16 sps:$4 sm:$0xff]  }
  0x99   :  { %551 = vmatprep.subr.bf16.mxu1 %v2449_v59  ;;  %v2559_v59 = vld [vmem:[#allocation9 + $0x18c] ss:$16 sps:$4 sm:$0xff]  }
  0x9c   :  { %552 = vmatpush1.bf16.msra.mxu1 %v2447_v62  ;;  %v2563_v62 = vld [vmem:[#allocation9 + $0x1a8] ss:$16 sps:$4 sm:$0xff]  }
  0x9d   :  { %553 = vmatprep.subr.bf16.mxu1 %v2452_v63  ;;  %v2571_v63 = vld [vmem:[#allocation9 + $0x1cc] ss:$16 sps:$4 sm:$0xff]  }
  0xa0   :  { %554 = vmatpush1.bf16.msra.mxu1 %v2450_v1  ;;  %v2577_v1 = vld [vmem:[#allocation9 + $0x1ec] ss:$16 sps:$4 sm:$0xff]  }
  0xa1   :  { %555 = vmatprep.subr.bf16.mxu1 %v2455_v3  ;;  %v2584_v3 = vld [vmem:[#allocation9 + $0x20c] ss:$16 sps:$4 sm:$0xff]  }
  0xa4   :  { %556 = vmatpush1.bf16.msra.mxu1 %v2453_v6  ;;  %v3016_v6 = vsub.s32 0, %v3013_v5 }
  0xa5   :  { %557 = vmatprep.subr.bf16.mxu1 %v2458_v7  ;;  %v3021_v7 = vld [vmem:[%s3072_s2] sm:$0xf] }
  0xa6   :  { %v153_v9 = vrot.slane %v3021_v7, %v3016_v6 }
  0xa8   :  { %558 = vmatpush1.bf16.msra.mxu1 %v2456_v10  ;;  %v157_v10 = vrot.slane %v3021_v7, %v3024_v8 }
  0xa9   :  { %559 = vmatprep.subr.bf16.mxu1 %v2461_v11 }
  0xac   :  { %560 = vmatpush1.bf16.msra.mxu1 %v2459_v14 }
  0xad   :  { %561 = vmatprep.subr.bf16.mxu1 %v2464_v15 }
  0xb0   :  { %562 = vmatpush1.bf16.msra.mxu1 %v2462_v16 }
  0xb1   :  { %563 = vmatprep.subr.bf16.mxu1 %v2467_v17 }
  0xb4   :  { %564 = vmatpush1.bf16.msra.mxu1 %v2465_v18 }
  0xb5   :  { %565 = vmatprep.subr.bf16.mxu1 %v2470_v19 }
  0xb8   :  { %566 = vmatpush1.bf16.msra.mxu1 %v2468_v20 }
  0xb9   :  { %567 = vmatprep.subr.bf16.mxu1 %v2473_v21 }
  0xbc   :  { %568 = vmatpush1.bf16.msra.mxu1 %v2471_v22 }
  0xbd   :  { %569 = vmatprep.subr.bf16.mxu1 %v2476_v23 }
  0xc0   :  { %570 = vmatpush1.bf16.msra.mxu1 %v2474_v24 }
  0xc1   :  { %571 = vmatprep.subr.bf16.mxu1 %v2479_v25  ;;  %v2579_v25 = vld [vmem:[#allocation9 + $0x200] ss:$16 sps:$4 sm:$0xff]  }
  0xc4   :  { %572 = vmatpush1.bf16.msra.mxu1 %v2477_v26  ;;  %v2582_v26 = vld [vmem:[#allocation9 + $0x208] ss:$16 sps:$4 sm:$0xff]  }
  0xc5   :  { %573 = vmatprep.subr.bf16.mxu1 %v2482_v27  ;;  %v2587_v27 = vld [vmem:[#allocation9 + $0x224] ss:$16 sps:$4 sm:$0xff]  }
  0xc8   :  { %574 = vmatpush1.bf16.msra.mxu1 %v2480_v28  ;;  %v2590_v28 = vld [vmem:[#allocation9 + $0x22c] ss:$16 sps:$4 sm:$0xff]  }
  0xc9   :  { %1482 = vmatprep.subr.bf16.mxu1 %v2487_v29  ;;  %v2585_v29 = vld [vmem:[#allocation9 + $0x220] ss:$16 sps:$4 sm:$0xff]  }
  0xcb   :  { %576 = vmatmul.mubr.bf16.vlgmr.msra.gmra.mrb[4].mxu1 %v3008_v45  ;;  %v2572_v45 = vld [vmem:[#allocation9 + $0x1c0] ss:$16 sps:$4 sm:$0xff]  }
  0xcc   :  { %1483 = vmatpush1.bf16.msra.mxu1 %v2485_v30  ;;  %1425 = vmatpush1.bf16.msra.mxu0 %v2572_v45  ;;  %v2588_v30 = vld [vmem:[#allocation9 + $0x228] ss:$16 sps:$4 sm:$0xff]   ;;  %v2609_v45 = vld [vmem:[#allocation9 + $0x2a0] ss:$16 sps:$4 sm:$0xff]  }
  0xcd   :  { %1484 = vmatprep.subr.bf16.mxu1 %v2493_v31  ;;  %1426 = vmatprep.subr.bf16.mxu0 %v2573_v47  ;;  %v2593_v31 = vld [vmem:[#allocation9 + $0x244] ss:$16 sps:$4 sm:$0xff]  }
  0xce   :  { %v2617_v47 = vld [vmem:[#allocation9 + $0x2c4] ss:$16 sps:$4 sm:$0xff]  }
  0xd0   :  { %1485 = vmatpush1.bf16.msra.mxu1 %v2491_v32  ;;  %1427 = vmatpush1.bf16.msra.mxu0 %v2578_v49  ;;  %v2596_v32 = vld [vmem:[#allocation9 + $0x24c] ss:$16 sps:$4 sm:$0xff]   ;;  %v2615_v49 = vld [vmem:[#allocation9 + $0x2c0] ss:$16 sps:$4 sm:$0xff]  }
  0xd1   :  { %1486 = vmatprep.subr.bf16.mxu1 %v2499_v33  ;;  %1439 = vmatprep.subr.bf16.mxu0 %v2581_v51  ;;  %v2591_v33 = vld [vmem:[#allocation9 + $0x240] ss:$16 sps:$4 sm:$0xff]   ;;  %v2623_v51 = vld [vmem:[#allocation9 + $0x2e4] ss:$16 sps:$4 sm:$0xff]  }
  0xd4   :  { %1487 = vmatpush1.bf16.msra.mxu1 %v2497_v34  ;;  %v2594_v34 = vld [vmem:[#allocation9 + $0x248] ss:$16 sps:$4 sm:$0xff]  }
  0xd5   :  { %1488 = vmatprep.subr.bf16.mxu1 %v2505_v35  ;;  %v2599_v35 = vld [vmem:[#allocation9 + $0x264] ss:$16 sps:$4 sm:$0xff]  }
  0xd8   :  { %1489 = vmatpush1.bf16.msra.mxu1 %v2503_v36  ;;  %v2602_v36 = vld [vmem:[#allocation9 + $0x26c] ss:$16 sps:$4 sm:$0xff]  }
  0xd9   :  { %1490 = vmatprep.subr.bf16.mxu1 %v2511_v37  ;;  %v2597_v37 = vld [vmem:[#allocation9 + $0x260] ss:$16 sps:$4 sm:$0xff]  }
  0xdc   :  { %1491 = vmatpush1.bf16.msra.mxu1 %v2509_v38  ;;  %v2600_v38 = vld [vmem:[#allocation9 + $0x268] ss:$16 sps:$4 sm:$0xff]  }
  0xdd   :  { %1492 = vmatprep.subr.bf16.mxu1 %v2517_v39  ;;  %v2605_v39 = vld [vmem:[#allocation9 + $0x284] ss:$16 sps:$4 sm:$0xff]  }
  0xe0   :  { %1493 = vmatpush1.bf16.msra.mxu1 %v2515_v40  ;;  %v2608_v40 = vld [vmem:[#allocation9 + $0x28c] ss:$16 sps:$4 sm:$0xff]  }
  0xe1   :  { %1494 = vmatprep.subr.bf16.mxu1 %v2523_v42  ;;  %v2606_v42 = vld [vmem:[#allocation9 + $0x288] ss:$16 sps:$4 sm:$0xff]  }
  0xe4   :  { %1495 = vmatpush1.bf16.msra.mxu1 %v2521_v44  ;;  %v2614_v44 = vld [vmem:[#allocation9 + $0x2ac] ss:$16 sps:$4 sm:$0xff]  }
  0xe5   :  { %1496 = vmatprep.subr.bf16.mxu1 %v2529_v46  ;;  %v2612_v46 = vld [vmem:[#allocation9 + $0x2a8] ss:$16 sps:$4 sm:$0xff]  }
  0xe8   :  { %1497 = vmatpush1.bf16.msra.mxu1 %v2527_v48  ;;  %v2620_v48 = vld [vmem:[#allocation9 + $0x2cc] ss:$16 sps:$4 sm:$0xff]  }
  0xe9   :  { %1498 = vmatprep.subr.bf16.mxu1 %v2535_v50  ;;  %v2618_v50 = vld [vmem:[#allocation9 + $0x2c8] ss:$16 sps:$4 sm:$0xff]  }
  0xec   :  { %1499 = vmatpush1.bf16.msra.mxu1 %v2533_v52  ;;  %v2626_v52 = vld [vmem:[#allocation9 + $0x2ec] ss:$16 sps:$4 sm:$0xff]  }
  0xed   :  { %1500 = vmatprep.subr.bf16.mxu1 %v2541_v53  ;;  %v2621_v53 = vld [vmem:[#allocation9 + $0x2e0] ss:$16 sps:$4 sm:$0xff]  }
  0xf0   :  { %1501 = vmatpush1.bf16.msra.mxu1 %v2539_v54  ;;  %v2624_v54 = vld [vmem:[#allocation9 + $0x2e8] ss:$16 sps:$4 sm:$0xff]  }
  0xf1   :  { %1502 = vmatprep.subr.bf16.mxu1 %v2547_v55  ;;  %v2629_v55 = vld [vmem:[#allocation9 + $0x304] ss:$16 sps:$4 sm:$0xff]  }
  0xf4   :  { %1503 = vmatpush1.bf16.msra.mxu1 %v2545_v56  ;;  %v2632_v56 = vld [vmem:[#allocation9 + $0x30c] ss:$16 sps:$4 sm:$0xff]  }
  0xf5   :  { %1504 = vmatprep.subr.bf16.mxu1 %v2553_v57  ;;  %v2627_v57 = vld [vmem:[#allocation9 + $0x300] ss:$16 sps:$4 sm:$0xff]  }
  0xf8   :  { %1505 = vmatpush1.bf16.msra.mxu1 %v2551_v58  ;;  %v2630_v58 = vld [vmem:[#allocation9 + $0x308] ss:$16 sps:$4 sm:$0xff]  }
  0xf9   :  { %1506 = vmatprep.subr.bf16.mxu1 %v2559_v59  ;;  %v2635_v59 = vld [vmem:[#allocation9 + $0x324] ss:$16 sps:$4 sm:$0xff]  }
  0xfc   :  { %1507 = vmatpush1.bf16.msra.mxu1 %v2557_v60  ;;  %v2638_v60 = vld [vmem:[#allocation9 + $0x32c] ss:$16 sps:$4 sm:$0xff]  }
  0xfd   :  { %1508 = vmatprep.subr.bf16.mxu1 %v2565_v61  ;;  %v2633_v61 = vld [vmem:[#allocation9 + $0x320] ss:$16 sps:$4 sm:$0xff]  }
 0x100   :  { %1509 = vmatpush1.bf16.msra.mxu1 %v2563_v62  ;;  %v2636_v62 = vld [vmem:[#allocation9 + $0x328] ss:$16 sps:$4 sm:$0xff]  }
 0x101   :  { %1510 = vmatprep.subr.bf16.mxu1 %v2571_v63  ;;  %v2641_v63 = vld [vmem:[#allocation9 + $0x344] ss:$16 sps:$4 sm:$0xff]  }
 0x104   :  { %1511 = vmatpush1.bf16.msra.mxu1 %v2569_v0  ;;  %v2644_v0 = vld [vmem:[#allocation9 + $0x34c] ss:$16 sps:$4 sm:$0xff]  }
 0x105   :  { %1512 = vmatprep.subr.bf16.mxu1 %v2577_v1  ;;  %v2639_v1 = vld [vmem:[#allocation9 + $0x340] ss:$16 sps:$4 sm:$0xff]  }
 0x108   :  { %1513 = vmatpush1.bf16.msra.mxu1 %v2575_v2  ;;  %v2642_v2 = vld [vmem:[#allocation9 + $0x348] ss:$16 sps:$4 sm:$0xff]  }
 0x109   :  { %1525 = vmatprep.subr.bf16.mxu1 %v2584_v3  ;;  %v2647_v3 = vld [vmem:[#allocation9 + $0x364] ss:$16 sps:$4 sm:$0xff]  }
 0x15e   :  { %v534_v11 = vpop.f32.mrb[0].mxu1 }
 0x15f   :  { %v535_v12 = vadd.f32 %v534_v11, %v153_v9  ;;  %v536_v13 = vpop.f32.mrb[1].mxu1  ;;  %v2653_v11 = vld [vmem:[#allocation9 + $0x384] ss:$16 sps:$4 sm:$0xff]  }
 0x160   :  { %v537_v14 = vadd.f32 %v536_v13, %v157_v10  ;;  %v538_v15 = vpop.f32.mrb[2].mxu1  ;;  %v2651_v13 = vld [vmem:[#allocation9 + $0x380] ss:$16 sps:$4 sm:$0xff]  }
 0x161   :  { %v586_v16 = vmax.f32 %v535_v12, 0.0  ;;  %v539_v17 = vadd.f32 %v538_v15, %v153_v9  ;;  %v540_v18 = vpop.f32.mrb[3].mxu1  ;;  %v2645_v9 = vld [vmem:[#allocation9 + $0x360] ss:$16 sps:$4 sm:$0xff]   ;;  %v2656_v12 = vld [vmem:[#allocation9 + $0x38c] ss:$16 sps:$4 sm:$0xff]  }
 0x162   :  { %v541_v19 = vadd.f32 %v540_v18, %v157_v10  ;;  %v587_v21 = vmax.f32 %v537_v14, 0.0  ;;  %v2648_v10 = vld [vmem:[#allocation9 + $0x368] ss:$16 sps:$4 sm:$0xff]   ;;  %v2659_v15 = vld [vmem:[#allocation9 + $0x3a4] ss:$16 sps:$4 sm:$0xff]   ;;  %v164_v18 = vsub.s32 3, %v3013_v5 }
 0x163   :  { %v590_v20 = vmax.f32 %v539_v17, 0.0  ;;  %v2654_v14 = vld [vmem:[#allocation9 + $0x388] ss:$16 sps:$4 sm:$0xff]   ;;  %v160_v17 = vsub.s32 2, %v3013_v5 }
 0x164   :  { %v591_v22 = vmax.f32 %v541_v19, 0.0  ;;  %v2657_v19 = vld [vmem:[#allocation9 + $0x3a0] ss:$16 sps:$4 sm:$0xff]  }
 0x165   :  { %v594_v23 = vpack.c.bf16 %v590_v20, %v586_v16  ;;  %v2662_v16 = vld [vmem:[#allocation9 + $0x3ac] ss:$16 sps:$4 sm:$0xff]   ;;  %v2660_v20 = vld [vmem:[#allocation9 + $0x3a8] ss:$16 sps:$4 sm:$0xff]  }
 0x166   :  { %v595_v24 = vpack.c.bf16 %v591_v22, %v587_v21  ;;  %v161_v21 = vrot.slane %v3021_v7, %v160_v17  ;;  %v2665_v22 = vld [vmem:[#allocation9 + $0x3c4] ss:$16 sps:$4 sm:$0xff]  }
 0x168   :  { %1428 = vmatprep.mubr.bf16.mxu0 %v595_v24  ;;  %1514 = vmatprep.mubr.bf16.mxu1 %v595_v24  ;;  %v165_v24 = vrot.slane %v3021_v7, %v164_v18  ;;  %v2672_v7 = vld [vmem:[#allocation9 + $0x3e8] ss:$16 sps:$4 sm:$0xff]  }
 0x169   :  { %1429 = vmatmul.mubr.bf16.vlgmr.msra.gmra.mrb[0].mxu0 %v594_v23  ;;  %1515 = vmatmul.mubr.bf16.vlgmr.msra.gmra.mrb[8].mxu1 %v594_v23  ;;  %v2668_v23 = vld [vmem:[#allocation9 + $0x3cc] ss:$16 sps:$4 sm:$0xff]  }
 0x16a   :  { %1440 = vmatpush1.bf16.msra.mxu0 %v2579_v25  ;;  %1526 = vmatpush1.bf16.msra.mxu1 %v2582_v26  ;;  %v2663_v26 = vld [vmem:[#allocation9 + $0x3c0] ss:$16 sps:$4 sm:$0xff]  }
 0x16b   :  { %1441 = vmatprep.subr.bf16.mxu0 %v2587_v27  ;;  %1527 = vmatprep.subr.bf16.mxu1 %v2590_v28  ;;  %v2666_v27 = vld [vmem:[#allocation9 + $0x3c8] ss:$16 sps:$4 sm:$0xff]  }
 0x16e   :  { %1442 = vmatpush1.bf16.msra.mxu0 %v2585_v29  ;;  %1528 = vmatpush1.bf16.msra.mxu1 %v2588_v30  ;;  %v2671_v30 = vld [vmem:[#allocation9 + $0x3e4] ss:$16 sps:$4 sm:$0xff]  }
 0x16f   :  { %1443 = vmatprep.subr.bf16.mxu0 %v2593_v31  ;;  %1529 = vmatprep.subr.bf16.mxu1 %v2596_v32  ;;  %v2674_v31 = vld [vmem:[#allocation9 + $0x3ec] ss:$16 sps:$4 sm:$0xff]  }
 0x172   :  { %1444 = vmatpush1.bf16.msra.mxu0 %v2591_v33  ;;  %1530 = vmatpush1.bf16.msra.mxu1 %v2594_v34 }
 0x173   :  { %1445 = vmatprep.subr.bf16.mxu0 %v2599_v35  ;;  %1531 = vmatprep.subr.bf16.mxu1 %v2602_v36 }
 0x176   :  { %1446 = vmatpush1.bf16.msra.mxu0 %v2597_v37  ;;  %1532 = vmatpush1.bf16.msra.mxu1 %v2600_v38  ;;  %v2669_v37 = vld [vmem:[#allocation9 + $0x3e0] ss:$16 sps:$4 sm:$0xff]  }
 0x177   :  { %1447 = vmatprep.subr.bf16.mxu0 %v2605_v39  ;;  %1533 = vmatprep.subr.bf16.mxu1 %v2608_v40  ;;  %v2677_v40 = vld [vmem:[#allocation10 + $0x4] ss:$8 sps:$4 sm:$0xff]  }
 0x17a   :  { %1448 = vmatpush1.bf16.msra.mxu0 %v2603_v41  ;;  %1534 = vmatpush1.bf16.msra.mxu1 %v2606_v42 }
 0x17b   :  { %1449 = vmatprep.subr.bf16.mxu0 %v2611_v43  ;;  %1535 = vmatprep.subr.bf16.mxu1 %v2614_v44 }
 0x17e   :  { %1450 = vmatpush1.bf16.msra.mxu0 %v2609_v45  ;;  %1536 = vmatpush1.bf16.msra.mxu1 %v2612_v46  ;;  %v2675_v45 = vld [vmem:[#allocation10] ss:$8 sps:$4 sm:$0xff]   ;;  %v2680_v46 = vld [vmem:[#allocation10 + $0x14] ss:$8 sps:$4 sm:$0xff]  }
 0x17f   :  { %1451 = vmatprep.subr.bf16.mxu0 %v2617_v47  ;;  %1537 = vmatprep.subr.bf16.mxu1 %v2620_v48  ;;  %v2678_v47 = vld [vmem:[#allocation10 + $0x10] ss:$8 sps:$4 sm:$0xff]   ;;  %v2683_v48 = vld [vmem:[#allocation10 + $0x24] ss:$8 sps:$4 sm:$0xff]  }
 0x182   :  { %1452 = vmatpush1.bf16.msra.mxu0 %v2615_v49  ;;  %1538 = vmatpush1.bf16.msra.mxu1 %v2618_v50  ;;  %v2681_v49 = vld [vmem:[#allocation10 + $0x20] ss:$8 sps:$4 sm:$0xff]   ;;  %v2686_v50 = vld [vmem:[#allocation10 + $0x34] ss:$8 sps:$4 sm:$0xff]  }
 0x183   :  { %1453 = vmatprep.subr.bf16.mxu0 %v2623_v51  ;;  %1539 = vmatprep.subr.bf16.mxu1 %v2626_v52  ;;  %v2684_v51 = vld [vmem:[#allocation10 + $0x30] ss:$8 sps:$4 sm:$0xff]   ;;  %v2689_v52 = vld [vmem:[#allocation10 + $0x44] ss:$8 sps:$4 sm:$0xff]  }
 0x186   :  { %1454 = vmatpush1.bf16.msra.mxu0 %v2621_v53  ;;  %1540 = vmatpush1.bf16.msra.mxu1 %v2624_v54  ;;  %v2687_v53 = vld [vmem:[#allocation10 + $0x40] ss:$8 sps:$4 sm:$0xff]   ;;  %v2692_v54 = vld [vmem:[#allocation10 + $0x54] ss:$8 sps:$4 sm:$0xff]  }
 0x187   :  { %1455 = vmatprep.subr.bf16.mxu0 %v2629_v55  ;;  %1541 = vmatprep.subr.bf16.mxu1 %v2632_v56  ;;  %v2690_v55 = vld [vmem:[#allocation10 + $0x50] ss:$8 sps:$4 sm:$0xff]   ;;  %v2695_v56 = vld [vmem:[#allocation10 + $0x64] ss:$8 sps:$4 sm:$0xff]  }
 0x18a   :  { %1456 = vmatpush1.bf16.msra.mxu0 %v2627_v57  ;;  %1542 = vmatpush1.bf16.msra.mxu1 %v2630_v58  ;;  %v2693_v57 = vld [vmem:[#allocation10 + $0x60] ss:$8 sps:$4 sm:$0xff]   ;;  %v2698_v58 = vld [vmem:[#allocation10 + $0x74] ss:$8 sps:$4 sm:$0xff]  }
 0x18b   :  { %1457 = vmatprep.subr.bf16.mxu0 %v2635_v59  ;;  %1543 = vmatprep.subr.bf16.mxu1 %v2638_v60  ;;  %v2696_v59 = vld [vmem:[#allocation10 + $0x70] ss:$8 sps:$4 sm:$0xff]   ;;  %v2701_v60 = vld [vmem:[#allocation10 + $0x84] ss:$8 sps:$4 sm:$0xff]  }
 0x18e   :  { %1458 = vmatpush1.bf16.msra.mxu0 %v2633_v61  ;;  %1544 = vmatpush1.bf16.msra.mxu1 %v2636_v62  ;;  %v2699_v61 = vld [vmem:[#allocation10 + $0x80] ss:$8 sps:$4 sm:$0xff]   ;;  %v2704_v62 = vld [vmem:[#allocation10 + $0x94] ss:$8 sps:$4 sm:$0xff]  }
 0x18f   :  { %1459 = vmatprep.subr.bf16.mxu0 %v2641_v63  ;;  %1545 = vmatprep.subr.bf16.mxu1 %v2644_v0  ;;  %v2702_v63 = vld [vmem:[#allocation10 + $0x90] ss:$8 sps:$4 sm:$0xff]   ;;  %v2707_v0 = vld [vmem:[#allocation10 + $0xa4] ss:$8 sps:$4 sm:$0xff]  }
 0x192   :  { %1460 = vmatpush1.bf16.msra.mxu0 %v2639_v1  ;;  %1546 = vmatpush1.bf16.msra.mxu1 %v2642_v2  ;;  %v2705_v1 = vld [vmem:[#allocation10 + $0xa0] ss:$8 sps:$4 sm:$0xff]   ;;  %v2710_v2 = vld [vmem:[#allocation10 + $0xb4] ss:$8 sps:$4 sm:$0xff]  }
 0x193   :  { %1461 = vmatprep.subr.bf16.mxu0 %v2647_v3  ;;  %1547 = vmatprep.subr.bf16.mxu1 %v2650_v4  ;;  %v2708_v3 = vld [vmem:[#allocation10 + $0xb0] ss:$8 sps:$4 sm:$0xff]   ;;  %v2713_v4 = vld [vmem:[#allocation10 + $0xc4] ss:$8 sps:$4 sm:$0xff]  }
 0x196   :  { %1462 = vmatpush1.bf16.msra.mxu0 %v2645_v9  ;;  %1548 = vmatpush1.bf16.msra.mxu1 %v2648_v10  ;;  %v2711_v9 = vld [vmem:[#allocation10 + $0xc0] ss:$8 sps:$4 sm:$0xff]   ;;  %v2716_v10 = vld [vmem:[#allocation10 + $0xd4] ss:$8 sps:$4 sm:$0xff]  }
 0x197   :  { %1463 = vmatprep.subr.bf16.mxu0 %v2653_v11  ;;  %1549 = vmatprep.subr.bf16.mxu1 %v2656_v12  ;;  %v2714_v11 = vld [vmem:[#allocation10 + $0xd0] ss:$8 sps:$4 sm:$0xff]   ;;  %v2719_v12 = vld [vmem:[#allocation10 + $0xe4] ss:$8 sps:$4 sm:$0xff]  }
 0x19a   :  { %1464 = vmatpush1.bf16.msra.mxu0 %v2651_v13  ;;  %1550 = vmatpush1.bf16.msra.mxu1 %v2654_v14  ;;  %v2717_v13 = vld [vmem:[#allocation10 + $0xe0] ss:$8 sps:$4 sm:$0xff]   ;;  %v2722_v14 = vld [vmem:[#allocation10 + $0xf4] ss:$8 sps:$4 sm:$0xff]  }
 0x19b   :  { %1465 = vmatprep.subr.bf16.mxu0 %v2659_v15  ;;  %1551 = vmatprep.subr.bf16.mxu1 %v2662_v16  ;;  %v2720_v15 = vld [vmem:[#allocation10 + $0xf0] ss:$8 sps:$4 sm:$0xff]   ;;  %v2725_v16 = vld [vmem:[#allocation10 + $0x104] ss:$8 sps:$4 sm:$0xff]  }
 0x19e   :  { %v577_v25 = vpop.f32.mrb[4].mxu1  ;;  %1466 = vmatpush1.bf16.msra.mxu0 %v2657_v19  ;;  %1552 = vmatpush1.bf16.msra.mxu1 %v2660_v20  ;;  %v734_v19 = vld [vmem:[%s3074_s4] sm:$0xf] }
 0x19f   :  { %v578_v28 = vadd.f32 %v577_v25, %v161_v21  ;;  %v579_v29 = vpop.f32.mrb[5].mxu1  ;;  %1467 = vmatprep.subr.bf16.mxu0 %v2665_v22  ;;  %1553 = vmatprep.subr.bf16.mxu1 %v2668_v23  ;;  %v739_v20 = vrot.slane %v734_v19, %v3016_v6  ;;  %v743_v22 = vrot.slane %v734_v19, %v3024_v8 }
 0x1a0   :  { %v580_v32 = vadd.f32 %v579_v29, %v165_v24  ;;  %v581_v33 = vpop.f32.mrb[6].mxu1  ;;  %v751_v23 = vrot.slane %v734_v19, %v164_v18 }
 0x1a1   :  { %v582_v34 = vadd.f32 %v581_v33, %v161_v21  ;;  %v583_v35 = vpop.f32.mrb[7].mxu1  ;;  %v588_v38 = vmax.f32 %v578_v28, 0.0  ;;  %v747_v21 = vrot.slane %v734_v19, %v160_v17  ;;  %v2770_v19 = vld [vmem:[#allocation10 + $0x1f4] ss:$8 sps:$4 sm:$0xff]  }
 0x1a2   :  { %v584_v36 = vadd.f32 %v583_v35, %v165_v24  ;;  %1468 = vmatpush1.bf16.msra.mxu0 %v2663_v26  ;;  %1554 = vmatpush1.bf16.msra.mxu1 %v2666_v27  ;;  %v589_v41 = vmax.f32 %v580_v32, 0.0 }
 0x1a3   :  { %v592_v39 = vmax.f32 %v582_v34, 0.0  ;;  %1469 = vmatprep.subr.bf16.mxu0 %v2671_v30  ;;  %1555 = vmatprep.subr.bf16.mxu1 %v2674_v31 }
 0x1a4   :  { %v593_v42 = vmax.f32 %v584_v36, 0.0 }
 0x1a5   :  { %v596_v43 = vpack.c.bf16 %v592_v39, %v588_v38 }
 0x1a6   :  { %v597_v44 = vpack.c.bf16 %v593_v42, %v589_v41  ;;  %1470 = vmatpush1.bf16.msra.mxu0 %v2669_v37  ;;  %1556 = vmatpush1.bf16.msra.mxu1 %v2672_v7 }
 0x1a7   :  { %1984 = vmatprep.subr.bf16.mxu0 %v2677_v40 }
 0x1a8   :  { %1471 = vmatprep.mubr.bf16.mxu0 %v597_v44  ;;  %1557 = vmatprep.mubr.bf16.mxu1 %v597_v44 }
 0x1a9   :  { %1472 = vmatmul.mubr.bf16.vlgmr.msra.gmra.mrb[0].mxu0 %v596_v43  ;;  %1558 = vmatmul.mubr.bf16.vlgmr.msra.gmra.mrb[8].mxu1 %v596_v43 }
 0x1aa   :  { %1985 = vmatpush1.bf16.msra.mxu0 %v2675_v45 }
 0x1ab   :  { %1986 = vmatprep.subr.bf16.mxu0 %v2680_v46 }
 0x1ae   :  { %1987 = vmatpush1.bf16.msra.mxu0 %v2678_v47 }
 0x1af   :  { %1988 = vmatprep.subr.bf16.mxu0 %v2683_v48  ;;  %v2723_v48 = vld [vmem:[#allocation10 + $0x100] ss:$8 sps:$4 sm:$0xff]  }
 0x1b2   :  { %1989 = vmatpush1.bf16.msra.mxu0 %v2681_v49  ;;  %v2728_v49 = vld [vmem:[#allocation10 + $0x114] ss:$8 sps:$4 sm:$0xff]  }
 0x1b3   :  { %1990 = vmatprep.subr.bf16.mxu0 %v2686_v50  ;;  %v2726_v50 = vld [vmem:[#allocation10 + $0x110] ss:$8 sps:$4 sm:$0xff]  }
 0x1b6   :  { %1991 = vmatpush1.bf16.msra.mxu0 %v2684_v51  ;;  %v2731_v51 = vld [vmem:[#allocation10 + $0x124] ss:$8 sps:$4 sm:$0xff]  }
 0x1b7   :  { %1992 = vmatprep.subr.bf16.mxu0 %v2689_v52  ;;  %v2729_v52 = vld [vmem:[#allocation10 + $0x120] ss:$8 sps:$4 sm:$0xff]  }
 0x1ba   :  { %1993 = vmatpush1.bf16.msra.mxu0 %v2687_v53  ;;  %v2734_v53 = vld [vmem:[#allocation10 + $0x134] ss:$8 sps:$4 sm:$0xff]  }
 0x1bb   :  { %1994 = vmatprep.subr.bf16.mxu0 %v2692_v54  ;;  %v2732_v54 = vld [vmem:[#allocation10 + $0x130] ss:$8 sps:$4 sm:$0xff]  }
 0x1be   :  { %1995 = vmatpush1.bf16.msra.mxu0 %v2690_v55  ;;  %v2737_v55 = vld [vmem:[#allocation10 + $0x144] ss:$8 sps:$4 sm:$0xff]  }
 0x1bf   :  { %1996 = vmatprep.subr.bf16.mxu0 %v2695_v56  ;;  %v2735_v56 = vld [vmem:[#allocation10 + $0x140] ss:$8 sps:$4 sm:$0xff]  }
 0x1c2   :  { %1997 = vmatpush1.bf16.msra.mxu0 %v2693_v57  ;;  %v2740_v57 = vld [vmem:[#allocation10 + $0x154] ss:$8 sps:$4 sm:$0xff]  }
 0x1c3   :  { %1998 = vmatprep.subr.bf16.mxu0 %v2698_v58  ;;  %v2738_v58 = vld [vmem:[#allocation10 + $0x150] ss:$8 sps:$4 sm:$0xff]  }
 0x1c6   :  { %1999 = vmatpush1.bf16.msra.mxu0 %v2696_v59  ;;  %v2743_v59 = vld [vmem:[#allocation10 + $0x164] ss:$8 sps:$4 sm:$0xff]  }
 0x1c7   :  { %2000 = vmatprep.subr.bf16.mxu0 %v2701_v60  ;;  %v2741_v60 = vld [vmem:[#allocation10 + $0x160] ss:$8 sps:$4 sm:$0xff]  }
 0x1ca   :  { %2001 = vmatpush1.bf16.msra.mxu0 %v2699_v61  ;;  %v2746_v61 = vld [vmem:[#allocation10 + $0x174] ss:$8 sps:$4 sm:$0xff]  }
 0x1cb   :  { %2002 = vmatprep.subr.bf16.mxu0 %v2704_v62  ;;  %v2744_v62 = vld [vmem:[#allocation10 + $0x170] ss:$8 sps:$4 sm:$0xff]  }
 0x1ce   :  { %2003 = vmatpush1.bf16.msra.mxu0 %v2702_v63  ;;  %v2749_v63 = vld [vmem:[#allocation10 + $0x184] ss:$8 sps:$4 sm:$0xff]  }
 0x1cf   :  { %2004 = vmatprep.subr.bf16.mxu0 %v2707_v0  ;;  %v2747_v0 = vld [vmem:[#allocation10 + $0x180] ss:$8 sps:$4 sm:$0xff]  }
 0x1d2   :  { %2005 = vmatpush1.bf16.msra.mxu0 %v2705_v1  ;;  %v2752_v1 = vld [vmem:[#allocation10 + $0x194] ss:$8 sps:$4 sm:$0xff]  }
 0x1d3   :  { %2006 = vmatprep.subr.bf16.mxu0 %v2710_v2  ;;  %v2750_v2 = vld [vmem:[#allocation10 + $0x190] ss:$8 sps:$4 sm:$0xff]  }
 0x1d6   :  { %2007 = vmatpush1.bf16.msra.mxu0 %v2708_v3  ;;  %v2755_v3 = vld [vmem:[#allocation10 + $0x1a4] ss:$8 sps:$4 sm:$0xff]  }
 0x1d7   :  { %2008 = vmatprep.subr.bf16.mxu0 %v2713_v4  ;;  %v2753_v4 = vld [vmem:[#allocation10 + $0x1a0] ss:$8 sps:$4 sm:$0xff]  }
 0x1da   :  { %2009 = vmatpush1.bf16.msra.mxu0 %v2711_v9  ;;  %v2758_v9 = vld [vmem:[#allocation10 + $0x1b4] ss:$8 sps:$4 sm:$0xff]  }
 0x1db   :  { %2010 = vmatprep.subr.bf16.mxu0 %v2716_v10  ;;  %v2756_v10 = vld [vmem:[#allocation10 + $0x1b0] ss:$8 sps:$4 sm:$0xff]  }
 0x1de   :  { %2011 = vmatpush1.bf16.msra.mxu0 %v2714_v11  ;;  %v2761_v11 = vld [vmem:[#allocation10 + $0x1c4] ss:$8 sps:$4 sm:$0xff]  }
 0x1df   :  { %2012 = vmatprep.subr.bf16.mxu0 %v2719_v12  ;;  %v2759_v12 = vld [vmem:[#allocation10 + $0x1c0] ss:$8 sps:$4 sm:$0xff]  }
 0x1e2   :  { %2013 = vmatpush1.bf16.msra.mxu0 %v2717_v13  ;;  %v2764_v13 = vld [vmem:[#allocation10 + $0x1d4] ss:$8 sps:$4 sm:$0xff]  }
 0x1e3   :  { %2014 = vmatprep.subr.bf16.mxu0 %v2722_v14  ;;  %v2762_v14 = vld [vmem:[#allocation10 + $0x1d0] ss:$8 sps:$4 sm:$0xff]  }
 0x1e6   :  { %2015 = vmatpush1.bf16.msra.mxu0 %v2720_v15  ;;  %v2767_v15 = vld [vmem:[#allocation10 + $0x1e4] ss:$8 sps:$4 sm:$0xff]  }
 0x1e7   :  { %2027 = vmatprep.subr.bf16.mxu0 %v2725_v16  ;;  %v2765_v16 = vld [vmem:[#allocation10 + $0x1e0] ss:$8 sps:$4 sm:$0xff]  }
 0x27c   :  { %v1473_v24 = vpop.f32.mrb[0].mxu0  ;;  %v1559_v25 = vpop.f32.mrb[8].mxu1 }
 0x27d   :  { %v2351_v26 = vadd.f32 %v1473_v24, %v739_v20  ;;  %v2355_v27 = vadd.f32 %v1559_v25, %v747_v21  ;;  %v1475_v28 = vpop.f32.mrb[1].mxu0  ;;  %v1561_v29 = vpop.f32.mrb[9].mxu1 }
 0x27e   :  { %v2352_v30 = vadd.f32 %v1475_v28, %v743_v22  ;;  %v2356_v31 = vadd.f32 %v1561_v29, %v751_v23  ;;  %v1477_v32 = vpop.f32.mrb[2].mxu0  ;;  %v1563_v33 = vpop.f32.mrb[10].mxu1 }
 0x27f   :  { %v2353_v34 = vadd.f32 %v1477_v32, %v739_v20  ;;  %v2357_v35 = vadd.f32 %v1563_v33, %v747_v21  ;;  %v1479_v36 = vpop.f32.mrb[3].mxu0  ;;  %v1565_v37 = vpop.f32.mrb[11].mxu1  ;;  %v1568_v38 = vmax.f32 %v2351_v26, 0.0  ;;  %v1570_v39 = vmax.f32 %v2355_v27, 0.0  ;;  %v2768_v20 = vld [vmem:[#allocation10 + $0x1f0] ss:$8 sps:$4 sm:$0xff]  }
 0x280   :  { %v2354_v17 = vadd.f32 %v1479_v36, %v743_v22  ;;  %v2358_v7 = vadd.f32 %v1565_v37, %v751_v23  ;;  %v1569_v40 = vmax.f32 %v2352_v30, 0.0  ;;  %v1571_v41 = vmax.f32 %v2356_v31, 0.0  ;;  %v1652_v21 = vld [vmem:[%s3076_s6] sm:$0x3]  ;;  %s2859_s6 = scalar_lea.vmem %s2080_s9, 512 }
 0x281   :  { %v1572_v5 = vmax.f32 %v2353_v34, 0.0  ;;  %v1574_v18 = vmax.f32 %v2357_v35, 0.0  ;;  %v1657_v22 = vrot.slane %v1652_v21, %v3016_v6  ;;  %v1661_v23 = vrot.slane %v1652_v21, %v3024_v8  ;;  %p2860_p4 = scmp.ne.s32.totalorder %s2080_s9, %s2859_s6  ;;  %p2865_p6 = scmp.lt.s32.totalorder %s2859_s6, %s2859_s6 }
 0x282   :  { %v1573_v42 = vmax.f32 %v2354_v17, 0.0  ;;  %v1575_v43 = vmax.f32 %v2358_v7, 0.0 }
 0x283   :  { %v1576_v44 = vpack.c.bf16 %v1572_v5, %v1568_v38  ;;  %v3047_v45 = vpack.c.bf16 %v1574_v18, %v1570_v39  ;;  %p2866_p7 = por %p2865_p6, %p2864_p5 }
 0x284   :  { %v1577_v46 = vpack.c.bf16 %v1573_v42, %v1569_v40  ;;  %v1579_v47 = vpack.c.bf16 %v1575_v43, %v1571_v41 }
 0x285   :  { %p2867_p8 = pnand %p2866_p7, %p2860_p4 }
 0x286   :  { %2016 = vmatprep.mubr.bf16.mxu0 %v1577_v46 }
 0x287   :  { %2017 = vmatmul.mubr.bf16.vlgmr.msra.gmra.mrb[4].mxu0 %v1576_v44 }
 0x288   :  { %2028 = vmatpush1.bf16.msra.mxu0 %v2723_v48  ;;  %2059 = vmatprep.mubr.bf16.mxu0 %v1579_v47 }
 0x289   :  { %2029 = vmatprep.subr.bf16.mxu0 %v2728_v49 }
 0x28c   :  { %2030 = vmatpush1.bf16.msra.mxu0 %v2726_v50 }
 0x28d   :  { %2031 = vmatprep.subr.bf16.mxu0 %v2731_v51 }
 0x290   :  { %2032 = vmatpush1.bf16.msra.mxu0 %v2729_v52 }
 0x291   :  { %2033 = vmatprep.subr.bf16.mxu0 %v2734_v53 }
 0x294   :  { %2034 = vmatpush1.bf16.msra.mxu0 %v2732_v54 }
 0x295   :  { %2035 = vmatprep.subr.bf16.mxu0 %v2737_v55 }
 0x298   :  { %2036 = vmatpush1.bf16.msra.mxu0 %v2735_v56 }
 0x299   :  { %2037 = vmatprep.subr.bf16.mxu0 %v2740_v57 }
 0x29c   :  { %2038 = vmatpush1.bf16.msra.mxu0 %v2738_v58 }
 0x29d   :  { %2039 = vmatprep.subr.bf16.mxu0 %v2743_v59 }
 0x2a0   :  { %2040 = vmatpush1.bf16.msra.mxu0 %v2741_v60 }
 0x2a1   :  { %2041 = vmatprep.subr.bf16.mxu0 %v2746_v61 }
 0x2a4   :  { %2042 = vmatpush1.bf16.msra.mxu0 %v2744_v62 }
 0x2a5   :  { %2043 = vmatprep.subr.bf16.mxu0 %v2749_v63 }
 0x2a8   :  { %2044 = vmatpush1.bf16.msra.mxu0 %v2747_v0 }
 0x2a9   :  { %2045 = vmatprep.subr.bf16.mxu0 %v2752_v1 }
 0x2ac   :  { %2046 = vmatpush1.bf16.msra.mxu0 %v2750_v2 }
 0x2ad   :  { %2047 = vmatprep.subr.bf16.mxu0 %v2755_v3 }
 0x2b0   :  { %2048 = vmatpush1.bf16.msra.mxu0 %v2753_v4 }
 0x2b1   :  { %2049 = vmatprep.subr.bf16.mxu0 %v2758_v9 }
 0x2b4   :  { %2050 = vmatpush1.bf16.msra.mxu0 %v2756_v10 }
 0x2b5   :  { %2051 = vmatprep.subr.bf16.mxu0 %v2761_v11 }
 0x2b8   :  { %2052 = vmatpush1.bf16.msra.mxu0 %v2759_v12 }
 0x2b9   :  { %2053 = vmatprep.subr.bf16.mxu0 %v2764_v13 }
 0x2bc   :  { %2054 = vmatpush1.bf16.msra.mxu0 %v2762_v14 }
 0x2bd   :  { %2055 = vmatprep.subr.bf16.mxu0 %v2767_v15 }
 0x2c0   :  { %2056 = vmatpush1.bf16.msra.mxu0 %v2765_v16 }
 0x2c1   :  { %2057 = vmatprep.subr.bf16.mxu0 %v2770_v19 }
 0x2c4   :  { %2058 = vmatpush1.bf16.msra.mxu0 %v2768_v20 }
 0x2c7   :  { %2060 = vmatmul.mubr.bf16.vlgmr.msra.gmra.mrb[4].mxu0 %v3047_v45 }
 0x39a   :  { %v2061_v24 = vpop.f32.mrb[4].mxu0 }
 0x39b   :  { %v2359_v25 = vadd.f32 %v2061_v24, %v1657_v22  ;;  %v2063_v26 = vpop.f32.mrb[5].mxu0 }
 0x39c   :  { %v2360_v27 = vadd.f32 %v2063_v26, %v1661_v23  ;;  %v2065_v28 = vpop.f32.mrb[6].mxu0 }
 0x39d   :  { %2070 = vst [vmem:[#allocation12] sm:$0xff] %v2359_v25  ;;  %v2361_v29 = vadd.f32 %v2065_v28, %v1657_v22  ;;  %v2067_v30 = vpop.f32.mrb[7].mxu0 }
 0x39e   :  { %2071 = vst [vmem:[#allocation12 + $0x8] sm:$0xff] %v2360_v27  ;;  %v2362_v31 = vadd.f32 %v2067_v30, %v1661_v23 }
 0x39f   :  { %2072 = vst [vmem:[#allocation12 + $0x10] sm:$0xff] %v2361_v29 }
 0x3a0   :  { %2073 = vst [vmem:[#allocation12 + $0x18] sm:$0xff] %v2362_v31 }
 0x3a1   :  { %2870 = shalt.err (!%p2867_p8)
}
 0x3a2   :  { %s2871_s14 = scalar_lea.hbm %s3077_s7, 512 }
 0x3a3   :  { %p2872_p9 = scmp.ne.s32.totalorder %s3077_s7, %s2871_s14  ;;  %p2875_p10 = scmp.lt.u32.totalorder %s2871_s14, %s3077_s7 }
 0x3a5   :  { %p2877_p11 = pnand %p2875_p10, %p2872_p9 }
 0x3a7   :  { %2880 = shalt.err (!%p2877_p11)
}
 0x3a8   :  { %2085 = dma.vmem_to_hbm [thread:$0]  %s2080_s9, 512, %s3077_s7, [#allocation6], %s2890_s11, %s2890_s11, %s2891_s12  }
 0x3a9   :  { %2887 = dma.done.wait [#allocation6], 512  }
 0x3aa   :  { %2888 = vsyncadd [#allocation6], 4294966784 }
 0x3ab   :  { %2089 = vsyncpa [#allocation5], 1 }
 0x3ac   :  { %2090 = vsyncpa [#allocation8], 1 }
 0x3ad   :  { %2091 = vsyncpa [#allocation11], 1 }
 0x3ae   :  { %2092 = vsyncpa [#allocation6], 1 }

</bundles_post_ra>
